<compile_context>
chip_gen: v6e
topology: v6e:2x2x1
jax: 0.10.0
libtpu: 0.0.40
codegen_flags: <defaults>
</compile_context>

<pallas_src>
import jax
import jax.numpy as jnp
from jax.experimental import pallas as pl
from jax.experimental.pallas import tpu as pltpu


def _gwnet_kernel(x_ref,              # (L*NP, V*Cin) f32   rows = (time l, padded batch n)
                  ws, bs,             # (V*Cin, V*C) bf16, (1, V*C) f32   start_conv (residual path)
                  wsfg0, wsfg1, bsfg, # (V*Cin, 2*V*C) bf16 x2, (1, 2*V*C) f32  start_conv∘(filter|gate)
                  wgcomb, bgc,        # (V*C, V*C) bf16, (1, V*C) f32     diffusion∘GCN-mlp (folded)
                  wef, bef,           # (V*C, V*E) bf16, (1, V*E) f32     end_conv_1 w/ folded BN
                  wl, bl,             # (V*E, 128) bf16, (1, 128) f32     last_linear (lane-padded)
                  out_ref):           # (NP, 128) f32
    f32 = jnp.float32
    NP = out_ref.shape[0]                 # padded batch rows (one time step)
    LpNP = x_ref.shape[0] - NP            # (L-1) * padded batch
    Lp = LpNP // NP                       # L-1 (static)
    VC = ws.shape[1]                      # V * residual_channels

    # ---- temporal taps directly from the raw input (start_conv folded in) ----
    xa_in = x_ref[:LpNP, :]               # time l      (L-1 steps)
    xb_in = x_ref[NP:, :]                 # time l+1    (L-1 steps)

    fg = (jnp.dot(xa_in, wsfg0[...], preferred_element_type=f32)
          + jnp.dot(xb_in, wsfg1[...], preferred_element_type=f32)
          + bsfg[...])                                                     # (LpNP, 2*V*C)
    g = jnp.tanh(fg[:, :VC]) * jax.nn.sigmoid(fg[:, VC:])                  # (LpNP, V*C), f32

    # ---- residual branch (only the trimmed residual is needed) ----
    xb = jnp.dot(xb_in, ws[...], preferred_element_type=f32) + bs[...]     # (LpNP, V*C)

    # ---- fused (2-hop diffusion + GCN mlp) + residual ----
    hg = jnp.dot(g, wgcomb[...], preferred_element_type=f32) + bgc[...] + xb

    # ---- end_conv_1 (BatchNorm eval folded in) + relu ----
    he = jnp.maximum(jnp.dot(hg, wef[...], preferred_element_type=f32) + bef[...], 0.0)

    # ---- mean over time: VPU sum of Lp sublane-aligned (NP, V*E) slabs ----
    acc = he[0:NP, :]
    for l in range(1, Lp):                # static unroll (Lp = 15 adds of (8, 256) tiles)
        acc = acc + he[l * NP:(l + 1) * NP, :]
    m = acc * (1.0 / Lp)                                                   # (NP, V*E)

    # ---- last_linear, lane-padded to 128 so the store is lane-dense ----
    out_ref[...] = jnp.dot(m, wl[...], preferred_element_type=f32) + bl[...]


def _kron_bd(A, B):
    """kron(A, B) via broadcast (no dense jnp.kron); A: (p,q), B: (r,s) -> (p*r, q*s)."""
    p, q = A.shape
    r, s = B.shape
    return (A[:, None, :, None] * B[None, :, None, :]).reshape(p * r, q * s)


@jax.jit
def model_dynamic_forward(x_nchw, packed):
    N, Cin, V, L = x_nchw.shape
    NP = ((N + 7) // 8) * 8                                   # pad batch rows to sublane tile

    # input: NCHW -> rows=(l, n_pad), lanes=(v, c_in)
    xt = jnp.transpose(x_nchw, (3, 0, 2, 1)).astype(jnp.float32)   # (L, N, V, Cin)
    xt = jnp.pad(xt, ((0, 0), (0, NP - N), (0, 0), (0, 0)))
    x2d = xt.reshape(L * NP, V * Cin)

    # batch-invariant adaptive adjacency + full diffusion/GCN fold (f32 / HIGHEST, once/call)
    P = jax.lax.Precision.HIGHEST
    a = jnp.maximum(jnp.dot(packed["es"], packed["et"], precision=P), 0.0)
    adp = jax.nn.softmax(a, axis=1)                                # (V, V)
    adp2 = jnp.dot(adp, adp, precision=P)
    wgcomb = (packed["wg0_big"]
              + _kron_bd(adp, packed["wg1t"])
              + _kron_bd(adp2, packed["wg2t"])).astype(jnp.bfloat16)   # (V*C, V*C)

    out_pad = pl.pallas_call(
        _gwnet_kernel,
        out_shape=jax.ShapeDtypeStruct((NP, 128), jnp.float32),
    )(x2d,
      packed["ws"], packed["bs"],
      packed["wsfg0"], packed["wsfg1"], packed["bsfg"],
      wgcomb, packed["bgc"],
      packed["wef"], packed["bef"],
      packed["wl"], packed["bl"])

    return out_pad[:N, :2]


def init_params(key, num_nodes, in_dim=2, residual_channels=32, dilation_channels=32,
                end_channels=32):
    C, D, E, V = residual_channels, dilation_channels, end_channels, num_nodes
    ks = jax.random.split(key, 16)
    rnd = lambda k, s, sc=0.1: (sc * jax.random.normal(k, s)).astype(jnp.float32)

    raw = dict(
        W_start=rnd(ks[0], (C, in_dim)), b_start=rnd(ks[1], (C,)),
        Wf=rnd(ks[2], (D, C, 1, 2)), bf=rnd(ks[3], (D,)),
        Wg=rnd(ks[4], (D, C, 1, 2)), bg=rnd(ks[5], (D,)),
        Es=rnd(ks[6], (V, 10), 1.0), Et=rnd(ks[7], (10, V), 1.0),
        Wgcn=rnd(ks[8], (C, 3 * D)), bgcn=rnd(ks[9], (C,)),
        We=rnd(ks[10], (E, C)), be=rnd(ks[11], (E,)),
        Wl=rnd(ks[12], (2, V * E)), bl=rnd(ks[13], (2,)),
        bn_gamma=jnp.ones((C,), jnp.float32), bn_beta=jnp.zeros((C,), jnp.float32),
        bn_mean=jnp.zeros((C,), jnp.float32), bn_var=jnp.ones((C,), jnp.float32),
    )

    eyeV = jnp.eye(V, dtype=jnp.float32)
    kron = jnp.kron
    P = jax.lax.Precision.HIGHEST
    bf16 = jnp.bfloat16

    # ---- BatchNorm (eval) folded into end_conv_1 ----
    scale = raw["bn_gamma"] * jax.lax.rsqrt(raw["bn_var"] + 1e-5)
    wef_small = scale[:, None] * raw["We"].T                                   # (C, E)
    bef_small = (jnp.dot(raw["bn_beta"] - raw["bn_mean"] * scale, raw["We"].T,
                         precision=P) + raw["be"])                             # (E,)

    # ---- start_conv (block-diagonal) and its composition with the temporal taps ----
    ws = kron(eyeV, raw["W_start"].T)                                          # (V*Cin, V*C)
    bs = jnp.tile(raw["b_start"], V)[None, :]                                  # (1, V*C)
    wfg0 = jnp.concatenate([kron(eyeV, raw["Wf"][:, :, 0, 0].T),
                            kron(eyeV, raw["Wg"][:, :, 0, 0].T)], axis=1)      # (V*C, 2*V*D)
    wfg1 = jnp.concatenate([kron(eyeV, raw["Wf"][:, :, 0, 1].T),
                            kron(eyeV, raw["Wg"][:, :, 0, 1].T)], axis=1)
    bfg = jnp.concatenate([jnp.tile(raw["bf"], V), jnp.tile(raw["bg"], V)])[None, :]
    wsfg0 = jnp.dot(ws, wfg0, precision=P)                                     # (V*Cin, 2*V*D)
    wsfg1 = jnp.dot(ws, wfg1, precision=P)
    bsfg = jnp.dot(bs, wfg0 + wfg1, precision=P) + bfg                         # (1, 2*V*D)

    # ---- GCN mlp blocks, for the per-call diffusion fold in the wrapper ----
    W0t = raw["Wgcn"][:, 0 * D:1 * D].T                                        # (D, C)
    W1t = raw["Wgcn"][:, 1 * D:2 * D].T
    W2t = raw["Wgcn"][:, 2 * D:3 * D].T
    wg0_big = kron(eyeV, W0t)                                                  # (V*D, V*C), adp-independent

    # last_linear: kernel lanes are (node, end_channel); torch flatten index is e*V + v.
    wl_r = jnp.transpose(raw["Wl"].reshape(2, E, V), (2, 1, 0)).reshape(V * E, 2)
    wl_pad = jnp.zeros((V * E, 128), jnp.float32).at[:, :2].set(wl_r)
    bl_pad = jnp.zeros((1, 128), jnp.float32).at[0, :2].set(raw["bl"])

    packed = dict(
        es=raw["Es"], et=raw["Et"],
        ws=ws.astype(bf16), bs=bs,
        wsfg0=wsfg0.astype(bf16), wsfg1=wsfg1.astype(bf16), bsfg=bsfg,
        wg0_big=wg0_big, wg1t=W1t, wg2t=W2t,                   # f32, combined per-call with adp
        bgc=jnp.tile(raw["bgcn"], V)[None, :],
        wef=kron(eyeV, wef_small).astype(bf16), bef=jnp.tile(bef_small, V)[None, :],
        wl=wl_pad.astype(bf16), bl=bl_pad,
    )
    return raw, packed


def ref_forward(x, r):
    """Pure-JAX mirror of the PyTorch eval-mode forward (NCHW), for verification."""
    P = jax.lax.Precision.HIGHEST
    conv1x1 = lambda t, W, b: (jnp.einsum('oc,ncvl->novl', W, t, precision=P)
                               + b[None, :, None, None])
    h = conv1x1(x, r["W_start"], r["b_start"])
    res = h
    filt = (jnp.einsum('oc,ncvl->novl', r["Wf"][:, :, 0, 0], h[..., :-1], precision=P)
            + jnp.einsum('oc,ncvl->novl', r["Wf"][:, :, 0, 1], h[..., 1:], precision=P)
            + r["bf"][None, :, None, None])
    gate = (jnp.einsum('oc,ncvl->novl', r["Wg"][:, :, 0, 0], h[..., :-1], precision=P)
            + jnp.einsum('oc,ncvl->novl', r["Wg"][:, :, 0, 1], h[..., 1:], precision=P)
            + r["bg"][None, :, None, None])
    g = jnp.tanh(filt) * jax.nn.sigmoid(gate)
    adp = jax.nn.softmax(jnp.maximum(jnp.dot(r["Es"], r["Et"], precision=P), 0.0), axis=1)
    x1 = jnp.einsum('ncvl,vw->ncwl', g, adp, precision=P)
    x2 = jnp.einsum('ncvl,vw->ncwl', x1, adp, precision=P)
    hcat = jnp.concatenate([g, x1, x2], axis=1)
    hg = conv1x1(hcat, r["Wgcn"], r["bgcn"]) + res[..., -g.shape[-1]:]
    scale = r["bn_gamma"] / jnp.sqrt(r["bn_var"] + 1e-5)
    hb = ((hg - r["bn_mean"][None, :, None, None]) * scale[None, :, None, None]
          + r["bn_beta"][None, :, None, None])
    he = jax.nn.relu(conv1x1(hb, r["We"], r["be"]))
    m = jnp.mean(he, axis=-1)                       # (N, E, V)
    flat = m.reshape(m.shape[0], -1)                # index = e*V + v
    return jnp.dot(flat, r["Wl"].T, precision=P) + r["bl"][None, :]


if __name__ == "__main__":
    key = jax.random.PRNGKey(0)
    N, in_dim, V, L = 2, 2, 8, 16
    kx, kp = jax.random.split(key)
    x = jax.random.normal(kx, (N, in_dim, V, L), dtype=jnp.float32)
    raw, packed = init_params(kp, num_nodes=V, in_dim=in_dim)

    out = jax.block_until_ready(model_dynamic_forward(x, packed))
    ref = ref_forward(x, raw)
    err = float(jnp.max(jnp.abs(out - ref)))

    assert out.shape == (N, 2), f"bad output shape {out.shape}"
    # kernel uses bf16-stored weights + default MXU precision (f32 accumulation);
    # reference uses f32 HIGHEST, so allow bf16-level divergence.
    assert err < 1e-2, f"kernel vs reference mismatch: max abs err = {err}"
    print("KERNEL_OK")
</pallas_src>

<mosaic_0001>
module attributes {stable_mosaic.version = 11 : i64} {
  func.func @_gwnet_kernel(%arg0: memref<128x16xf32, #tpu.memory_space<vmem>>, %arg1: memref<16x256xbf16, #tpu.memory_space<vmem>>, %arg2: memref<1x256xf32, #tpu.memory_space<vmem>>, %arg3: memref<16x512xbf16, #tpu.memory_space<vmem>>, %arg4: memref<16x512xbf16, #tpu.memory_space<vmem>>, %arg5: memref<1x512xf32, #tpu.memory_space<vmem>>, %arg6: memref<256x256xbf16, #tpu.memory_space<vmem>>, %arg7: memref<1x256xf32, #tpu.memory_space<vmem>>, %arg8: memref<256x256xbf16, #tpu.memory_space<vmem>>, %arg9: memref<1x256xf32, #tpu.memory_space<vmem>>, %arg10: memref<256x128xbf16, #tpu.memory_space<vmem>>, %arg11: memref<1x128xf32, #tpu.memory_space<vmem>>, %arg12: memref<8x128xf32, #tpu.memory_space<vmem>>) attributes {dimension_semantics = [], scalar_prefetch = 0 : i64, scratch_operands = 0 : i64, tpu.core_type = #tpu.core_type<tc>} {
    %c0 = arith.constant 0 : index
    %c0_0 = arith.constant 0 : index
    %0 = vector.load %arg0[%c0, %c0_0] : memref<128x16xf32, #tpu.memory_space<vmem>>, vector<120x16xf32>
    %c8 = arith.constant 8 : index
    %c0_1 = arith.constant 0 : index
    %1 = vector.load %arg0[%c8, %c0_1] : memref<128x16xf32, #tpu.memory_space<vmem>>, vector<120x16xf32>
    %c0_2 = arith.constant 0 : index
    %c0_3 = arith.constant 0 : index
    %2 = vector.load %arg3[%c0_2, %c0_3] : memref<16x512xbf16, #tpu.memory_space<vmem>>, vector<16x512xbf16>
    %cst = arith.constant dense<0.000000e+00> : vector<120x512xf32>
    %3 = tpu.matmul %0, %2, %cst {dimension_numbers = #tpu.dot_dimension_numbers<[1], [0], [0], [1], [0, 0, 1, 1], [], []>} : vector<120x16xf32>, vector<16x512xbf16>, vector<120x512xf32> -> vector<120x512xf32>
    %c0_4 = arith.constant 0 : index
    %c0_5 = arith.constant 0 : index
    %4 = vector.load %arg4[%c0_4, %c0_5] : memref<16x512xbf16, #tpu.memory_space<vmem>>, vector<16x512xbf16>
    %cst_6 = arith.constant dense<0.000000e+00> : vector<120x512xf32>
    %5 = tpu.matmul %1, %4, %cst_6 {dimension_numbers = #tpu.dot_dimension_numbers<[1], [0], [0], [1], [0, 0, 1, 1], [], []>} : vector<120x16xf32>, vector<16x512xbf16>, vector<120x512xf32> -> vector<120x512xf32>
    %6 = arith.addf %3, %5 : vector<120x512xf32>
    %c0_7 = arith.constant 0 : index
    %c0_8 = arith.constant 0 : index
    %7 = vector.load %arg5[%c0_7, %c0_8] : memref<1x512xf32, #tpu.memory_space<vmem>>, vector<1x512xf32>
    %8 = vector.broadcast %7 : vector<1x512xf32> to vector<120x512xf32>
    %9 = arith.addf %6, %8 : vector<120x512xf32>
    %10 = vector.extract_strided_slice %9 {offsets = [0, 0], sizes = [120, 256], strides = [1, 1]} : vector<120x512xf32> to vector<120x256xf32>
    %11 = math.tanh %10 : vector<120x256xf32>
    %12 = vector.extract_strided_slice %9 {offsets = [0, 256], sizes = [120, 256], strides = [1, 1]} : vector<120x512xf32> to vector<120x256xf32>
    %13 = arith.negf %12 : vector<120x256xf32>
    %14 = math.exp %13 : vector<120x256xf32>
    %cst_9 = arith.constant 1.000000e+00 : f32
    %15 = vector.broadcast %cst_9 : f32 to vector<120x256xf32>
    %16 = arith.addf %15, %14 : vector<120x256xf32>
    %17 = arith.divf %15, %16 : vector<120x256xf32>
    %18 = arith.mulf %11, %17 : vector<120x256xf32>
    %c0_10 = arith.constant 0 : index
    %c0_11 = arith.constant 0 : index
    %19 = vector.load %arg1[%c0_10, %c0_11] : memref<16x256xbf16, #tpu.memory_space<vmem>>, vector<16x256xbf16>
    %cst_12 = arith.constant dense<0.000000e+00> : vector<120x256xf32>
    %20 = tpu.matmul %1, %19, %cst_12 {dimension_numbers = #tpu.dot_dimension_numbers<[1], [0], [0], [1], [0, 0, 1, 1], [], []>} : vector<120x16xf32>, vector<16x256xbf16>, vector<120x256xf32> -> vector<120x256xf32>
    %c0_13 = arith.constant 0 : index
    %c0_14 = arith.constant 0 : index
    %21 = vector.load %arg2[%c0_13, %c0_14] : memref<1x256xf32, #tpu.memory_space<vmem>>, vector<1x256xf32>
    %22 = vector.broadcast %21 : vector<1x256xf32> to vector<120x256xf32>
    %23 = arith.addf %20, %22 : vector<120x256xf32>
    %c0_15 = arith.constant 0 : index
    %c0_16 = arith.constant 0 : index
    %24 = vector.load %arg6[%c0_15, %c0_16] : memref<256x256xbf16, #tpu.memory_space<vmem>>, vector<256x256xbf16>
    %cst_17 = arith.constant dense<0.000000e+00> : vector<120x256xf32>
    %25 = tpu.matmul %18, %24, %cst_17 {dimension_numbers = #tpu.dot_dimension_numbers<[1], [0], [0], [1], [0, 0, 1, 1], [], []>} : vector<120x256xf32>, vector<256x256xbf16>, vector<120x256xf32> -> vector<120x256xf32>
    %c0_18 = arith.constant 0 : index
    %c0_19 = arith.constant 0 : index
    %26 = vector.load %arg7[%c0_18, %c0_19] : memref<1x256xf32, #tpu.memory_space<vmem>>, vector<1x256xf32>
    %27 = vector.broadcast %26 : vector<1x256xf32> to vector<120x256xf32>
    %28 = arith.addf %25, %27 : vector<120x256xf32>
    %29 = arith.addf %28, %23 : vector<120x256xf32>
    %c0_20 = arith.constant 0 : index
    %c0_21 = arith.constant 0 : index
    %30 = vector.load %arg8[%c0_20, %c0_21] : memref<256x256xbf16, #tpu.memory_space<vmem>>, vector<256x256xbf16>
    %cst_22 = arith.constant dense<0.000000e+00> : vector<120x256xf32>
    %31 = tpu.matmul %29, %30, %cst_22 {dimension_numbers = #tpu.dot_dimension_numbers<[1], [0], [0], [1], [0, 0, 1, 1], [], []>} : vector<120x256xf32>, vector<256x256xbf16>, vector<120x256xf32> -> vector<120x256xf32>
    %c0_23 = arith.constant 0 : index
    %c0_24 = arith.constant 0 : index
    %32 = vector.load %arg9[%c0_23, %c0_24] : memref<1x256xf32, #tpu.memory_space<vmem>>, vector<1x256xf32>
    %33 = vector.broadcast %32 : vector<1x256xf32> to vector<120x256xf32>
    %34 = arith.addf %31, %33 : vector<120x256xf32>
    %cst_25 = arith.constant 0.000000e+00 : f32
    %35 = vector.broadcast %cst_25 : f32 to vector<120x256xf32>
    %36 = arith.maximumf %34, %35 : vector<120x256xf32>
    %37 = vector.extract_strided_slice %36 {offsets = [0, 0], sizes = [8, 256], strides = [1, 1]} : vector<120x256xf32> to vector<8x256xf32>
    %38 = vector.extract_strided_slice %36 {offsets = [8, 0], sizes = [8, 256], strides = [1, 1]} : vector<120x256xf32> to vector<8x256xf32>
    %39 = arith.addf %37, %38 : vector<8x256xf32>
    %40 = vector.extract_strided_slice %36 {offsets = [16, 0], sizes = [8, 256], strides = [1, 1]} : vector<120x256xf32> to vector<8x256xf32>
    %41 = arith.addf %39, %40 : vector<8x256xf32>
    %42 = vector.extract_strided_slice %36 {offsets = [24, 0], sizes = [8, 256], strides = [1, 1]} : vector<120x256xf32> to vector<8x256xf32>
    %43 = arith.addf %41, %42 : vector<8x256xf32>
    %44 = vector.extract_strided_slice %36 {offsets = [32, 0], sizes = [8, 256], strides = [1, 1]} : vector<120x256xf32> to vector<8x256xf32>
    %45 = arith.addf %43, %44 : vector<8x256xf32>
    %46 = vector.extract_strided_slice %36 {offsets = [40, 0], sizes = [8, 256], strides = [1, 1]} : vector<120x256xf32> to vector<8x256xf32>
    %47 = arith.addf %45, %46 : vector<8x256xf32>
    %48 = vector.extract_strided_slice %36 {offsets = [48, 0], sizes = [8, 256], strides = [1, 1]} : vector<120x256xf32> to vector<8x256xf32>
    %49 = arith.addf %47, %48 : vector<8x256xf32>
    %50 = vector.extract_strided_slice %36 {offsets = [56, 0], sizes = [8, 256], strides = [1, 1]} : vector<120x256xf32> to vector<8x256xf32>
    %51 = arith.addf %49, %50 : vector<8x256xf32>
    %52 = vector.extract_strided_slice %36 {offsets = [64, 0], sizes = [8, 256], strides = [1, 1]} : vector<120x256xf32> to vector<8x256xf32>
    %53 = arith.addf %51, %52 : vector<8x256xf32>
    %54 = vector.extract_strided_slice %36 {offsets = [72, 0], sizes = [8, 256], strides = [1, 1]} : vector<120x256xf32> to vector<8x256xf32>
    %55 = arith.addf %53, %54 : vector<8x256xf32>
    %56 = vector.extract_strided_slice %36 {offsets = [80, 0], sizes = [8, 256], strides = [1, 1]} : vector<120x256xf32> to vector<8x256xf32>
    %57 = arith.addf %55, %56 : vector<8x256xf32>
    %58 = vector.extract_strided_slice %36 {offsets = [88, 0], sizes = [8, 256], strides = [1, 1]} : vector<120x256xf32> to vector<8x256xf32>
    %59 = arith.addf %57, %58 : vector<8x256xf32>
    %60 = vector.extract_strided_slice %36 {offsets = [96, 0], sizes = [8, 256], strides = [1, 1]} : vector<120x256xf32> to vector<8x256xf32>
    %61 = arith.addf %59, %60 : vector<8x256xf32>
    %62 = vector.extract_strided_slice %36 {offsets = [104, 0], sizes = [8, 256], strides = [1, 1]} : vector<120x256xf32> to vector<8x256xf32>
    %63 = arith.addf %61, %62 : vector<8x256xf32>
    %64 = vector.extract_strided_slice %36 {offsets = [112, 0], sizes = [8, 256], strides = [1, 1]} : vector<120x256xf32> to vector<8x256xf32>
    %65 = arith.addf %63, %64 : vector<8x256xf32>
    %cst_26 = arith.constant 0.0666666701 : f32
    %66 = vector.broadcast %cst_26 : f32 to vector<8x256xf32>
    %67 = arith.mulf %65, %66 : vector<8x256xf32>
    %c0_27 = arith.constant 0 : index
    %c0_28 = arith.constant 0 : index
    %68 = vector.load %arg10[%c0_27, %c0_28] : memref<256x128xbf16, #tpu.memory_space<vmem>>, vector<256x128xbf16>
    %cst_29 = arith.constant dense<0.000000e+00> : vector<8x128xf32>
    %69 = tpu.matmul %67, %68, %cst_29 {dimension_numbers = #tpu.dot_dimension_numbers<[1], [0], [0], [1], [0, 0, 1, 1], [], []>} : vector<8x256xf32>, vector<256x128xbf16>, vector<8x128xf32> -> vector<8x128xf32>
    %c0_30 = arith.constant 0 : index
    %c0_31 = arith.constant 0 : index
    %70 = vector.load %arg11[%c0_30, %c0_31] : memref<1x128xf32, #tpu.memory_space<vmem>>, vector<1x128xf32>
    %71 = vector.broadcast %70 : vector<1x128xf32> to vector<8x128xf32>
    %72 = arith.addf %69, %71 : vector<8x128xf32>
    %c0_32 = arith.constant 0 : index
    %c0_33 = arith.constant 0 : index
    %73 = vector.load %arg12[%c0_32, %c0_33] : memref<8x128xf32, #tpu.memory_space<vmem>>, vector<8x128xf32>
    tpu.vector_store %arg12[%c0_32, %c0_33], %72 {strides = array<i32>} : memref<8x128xf32, #tpu.memory_space<vmem>>, vector<8x128xf32>,
    return
  }
}

</mosaic_0001>

<bundles_post_ra>
// kernel: model_dynamic_forward.1
= control target key start
LH: loop header
LB: loop body
LE: loop exit
PB: predicated region body
PF: predicated region fallthrough
CT: control target
= control target key end

     0   :  { %v2563_v1 = vmov 0.0   ;;  %vm86_vm0 = vcmask 130048   ;;  %s3727_s4 = inlined_call_operand.vmem [shape: bf16[16,512], index: 4, kind: input, shape index: {}]   ;;  %s3728_s0 = inlined_call_operand.vmem [shape: f32[128,16], index: 0, kind: input, shape index: {}]   ;;  %s3729_s3 = inlined_call_operand.vmem [shape: bf16[16,512], index: 3, kind: input, shape index: {}]   ;;  %s3730_s6 = inlined_call_operand.vmem [shape: bf16[256,256], index: 6, kind: input, shape index: {}]   ;;  %s3731_s1 = inlined_call_operand.vmem [shape: bf16[16,256], index: 1, kind: input, shape index: {}]   ;;  %s3732_s8 = inlined_call_operand.vmem [shape: bf16[256,256], index: 8, kind: input, shape index: {}]   ;;  %s3733_s5 = inlined_call_operand.vmem [shape: f32[1,512], index: 5, kind: input, shape index: {}]   ;;  %s3734_s2 = inlined_call_operand.vmem [shape: f32[1,256], index: 2, kind: input, shape index: {}]   ;;  %s3735_s7 = inlined_call_operand.vmem [shape: f32[1,256], index: 7, kind: input, shape index: {}]   ;;  %s3736_s10 = inlined_call_operand.vmem [shape: bf16[256,128], index: 10, kind: input, shape index: {}]   ;;  %s3737_s9 = inlined_call_operand.vmem [shape: f32[1,256], index: 9, kind: input, shape index: {}]   ;;  %s3738_s11 = inlined_call_operand.vmem [shape: f32[1,128], index: 11, kind: input, shape index: {}]   ;;  %s3739_s12 = inlined_call_operand.vmem [shape: f32[8,128], index: 12, kind: output, shape index: {}]  }
   0x1   :  { %v2256_v0 = vld [vmem:[%s3727_s4 + $0x4] ss:$16 sps:$4 sm:$0xff]   ;;  %164 = vmatprep.mubr.f32.mxu0 %v2563_v1  ;;  %212 = vmatprep.mubr.f32.mxu1 %v2563_v1  ;;  %v2258_v2 = vld [vmem:[%s3727_s4] ss:$16 sps:$4 sm:$0xff]   ;;  %v2640_v3 = vld [vmem:[%s3728_s0 + $0x8] sm:$0xff] }
   0x2   :  { %146 = vmatprep.subr.bf16.mxu0 %v2256_v0  ;;  %2253 = vmatprep.subr.bf16.mxu1 %v2256_v0  ;;  %v2645_v4 = vld [vmem:[%s3728_s0 + $0x48] sm:$0xff]  ;;  %v2661_v7 = vld [vmem:[%s3728_s0 + $0x10] sm:$0xff]  ;;  %v2687_v12 = vld [vmem:[%s3728_s0 + $0x18] sm:$0xff] }
   0x3   :  { %147 = vmatpush1.bf16.msra.mxu0 %v2258_v2  ;;  %2254 = vmatpush1.bf16.msra.mxu1 %v2258_v2  ;;  %v2259_v5 = vld [vmem:[%s3727_s4 + $0x8] ss:$16 sps:$4 sm:$0xff]   ;;  %v2261_v6 = vld [vmem:[%s3727_s4 + $0xc] ss:$16 sps:$4 sm:$0xff]   ;;  %v2666_v8 = vld [vmem:[%s3728_s0 + $0x50] sm:$0xff] }
   0x4   :  { %269 = vmatprep.subr.bf16.mxu1 %v2261_v6  ;;  %v2264_v9 = vld [vmem:[%s3729_s3 + $0x4] ss:$16 sps:$4 sm:$0xff]   ;;  %v2262_v10 = vld [vmem:[%s3729_s3] ss:$16 sps:$4 sm:$0xff]   ;;  %v2267_v11 = vld [vmem:[%s3729_s3 + $0xc] ss:$16 sps:$4 sm:$0xff]  }
   0x5   :  { %v2692_v13 = vld [vmem:[%s3728_s0 + $0x58] sm:$0xff]  ;;  %415 = vmatprep.subr.bf16.mxu0 %v2264_v9  ;;  %v2703_v14 = vld [vmem:[%s3728_s0 + $0x20] sm:$0xff]  ;;  %v2719_v16 = vld [vmem:[%s3728_s0 + $0x28] sm:$0xff] }
   0x6   :  { %2042 = vmatmul.mubr.msk.f32.vlgmr.msra.gmra.mxu0 %vm86_vm0, %v2640_v3  ;;  %2050 = vmatmul.mubr.msk.f32.vlgmr.msra.gmra.mxu1 %vm86_vm0, %v2645_v4  ;;  %v2708_v15 = vld [vmem:[%s3728_s0 + $0x60] sm:$0xff]  ;;  %v2724_v17 = vld [vmem:[%s3728_s0 + $0x68] sm:$0xff]  ;;  %v2735_v18 = vld [vmem:[%s3728_s0 + $0x30] sm:$0xff] }
   0x7   :  { %270 = vmatpush1.bf16.msra.mxu1 %v2259_v5  ;;  %170 = vmatprep.mubr.f32.mxu0 %v2563_v1  ;;  %v2740_v19 = vld [vmem:[%s3728_s0 + $0x70] sm:$0xff]  ;;  %v2751_v20 = vld [vmem:[%s3728_s0 + $0x38] sm:$0xff]  ;;  %v2767_v22 = vld [vmem:[%s3728_s0 + $0x40] sm:$0xff] }
   0x8   :  { %218 = vmatprep.mubr.f32.mxu1 %v2563_v1  ;;  %538 = vmatprep.subr.bf16.mxu1 %v2267_v11  ;;  %v2756_v21 = vld [vmem:[%s3728_s0 + $0x78] sm:$0xff]  ;;  %v42_v24 = vld [vmem:[%s3728_s0] sm:$0xff] }
   0x9   :  { %416 = vmatpush1.bf16.msra.mxu0 %v2262_v10  ;;  %v2265_v23 = vld [vmem:[%s3729_s3 + $0x8] ss:$16 sps:$4 sm:$0xff]   ;;  %v2270_v25 = vld [vmem:[%s3730_s6 + $0x74] ss:$8 sps:$4 sm:$0xff]   ;;  %v2276_v27 = vld [vmem:[%s3730_s6 + $0x64] ss:$8 sps:$4 sm:$0xff]  }
   0xa   :  { %2043 = vmatmul.mubr.msk.f32.gmra.mxu0 %vm86_vm0, %v2661_v7  ;;  %2051 = vmatmul.mubr.msk.f32.gmra.mxu1 %vm86_vm0, %v2666_v8  ;;  %v2268_v26 = vld [vmem:[%s3730_s6 + $0x70] ss:$8 sps:$4 sm:$0xff]   ;;  %v2274_v28 = vld [vmem:[%s3730_s6 + $0x60] ss:$8 sps:$4 sm:$0xff]   ;;  %v2279_v29 = vld [vmem:[%s3730_s6 + $0x54] ss:$8 sps:$4 sm:$0xff]  }
   0xb   :  { %176 = vmatprep.mubr.f32.mxu0 %v2563_v1  ;;  %224 = vmatprep.mubr.f32.mxu1 %v2563_v1  ;;  %v2277_v30 = vld [vmem:[%s3730_s6 + $0x50] ss:$8 sps:$4 sm:$0xff]   ;;  %v2271_v31 = vld [vmem:[%s3731_s1] ss:$8 sps:$4 sm:$0xff]   ;;  %v2273_v32 = vld [vmem:[%s3731_s1 + $0x4] ss:$8 sps:$4 sm:$0xff]  }
   0xc   :  { %v2280_v33 = vld [vmem:[%s3730_s6 + $0x40] ss:$8 sps:$4 sm:$0xff]   ;;  %v2282_v34 = vld [vmem:[%s3730_s6 + $0x44] ss:$8 sps:$4 sm:$0xff]   ;;  %1007 = vmatprep.subr.bf16.mxu0 %v2273_v32  ;;  %v2285_v35 = vld [vmem:[%s3730_s6 + $0x34] ss:$8 sps:$4 sm:$0xff]  }
   0xd   :  { %v2283_v36 = vld [vmem:[%s3730_s6 + $0x30] ss:$8 sps:$4 sm:$0xff]   ;;  %v2288_v37 = vld [vmem:[%s3730_s6 + $0x24] ss:$8 sps:$4 sm:$0xff]   ;;  %v2286_v38 = vld [vmem:[%s3730_s6 + $0x20] ss:$8 sps:$4 sm:$0xff]  }
   0xe   :  { %2044 = vmatmul.mubr.msk.f32.gmra.mxu0 %vm86_vm0, %v2687_v12  ;;  %2052 = vmatmul.mubr.msk.f32.gmra.mxu1 %vm86_vm0, %v2692_v13  ;;  %v2291_v39 = vld [vmem:[%s3730_s6 + $0x14] ss:$8 sps:$4 sm:$0xff]   ;;  %v2289_v40 = vld [vmem:[%s3730_s6 + $0x10] ss:$8 sps:$4 sm:$0xff]   ;;  %v2294_v41 = vld [vmem:[%s3730_s6 + $0x4] ss:$8 sps:$4 sm:$0xff]  }
   0xf   :  { %182 = vmatprep.mubr.f32.mxu0 %v2563_v1  ;;  %230 = vmatprep.mubr.f32.mxu1 %v2563_v1  ;;  %v2292_v42 = vld [vmem:[%s3730_s6] ss:$8 sps:$4 sm:$0xff]   ;;  %v2297_v43 = vld [vmem:[%s3730_s6 + $0xf4] ss:$8 sps:$4 sm:$0xff]   ;;  %v2295_v44 = vld [vmem:[%s3730_s6 + $0xf0] ss:$8 sps:$4 sm:$0xff]  }
  0x10   :  { %v2300_v45 = vld [vmem:[%s3730_s6 + $0xe4] ss:$8 sps:$4 sm:$0xff]   ;;  %v2298_v46 = vld [vmem:[%s3730_s6 + $0xe0] ss:$8 sps:$4 sm:$0xff]   ;;  %v2303_v47 = vld [vmem:[%s3730_s6 + $0xd4] ss:$8 sps:$4 sm:$0xff]  }
  0x11   :  { %v2301_v48 = vld [vmem:[%s3730_s6 + $0xd0] ss:$8 sps:$4 sm:$0xff]   ;;  %v2306_v49 = vld [vmem:[%s3730_s6 + $0xc4] ss:$8 sps:$4 sm:$0xff]   ;;  %v2304_v50 = vld [vmem:[%s3730_s6 + $0xc0] ss:$8 sps:$4 sm:$0xff]  }
  0x12   :  { %2045 = vmatmul.mubr.msk.f32.gmra.mxu0 %vm86_vm0, %v2703_v14  ;;  %2053 = vmatmul.mubr.msk.f32.gmra.mxu1 %vm86_vm0, %v2708_v15  ;;  %v2309_v51 = vld [vmem:[%s3730_s6 + $0xb4] ss:$8 sps:$4 sm:$0xff]   ;;  %v2307_v52 = vld [vmem:[%s3730_s6 + $0xb0] ss:$8 sps:$4 sm:$0xff]   ;;  %v2312_v53 = vld [vmem:[%s3730_s6 + $0xa4] ss:$8 sps:$4 sm:$0xff]  }
  0x13   :  { %188 = vmatprep.mubr.f32.mxu0 %v2563_v1  ;;  %236 = vmatprep.mubr.f32.mxu1 %v2563_v1  ;;  %v2310_v54 = vld [vmem:[%s3730_s6 + $0xa0] ss:$8 sps:$4 sm:$0xff]   ;;  %v2315_v55 = vld [vmem:[%s3730_s6 + $0x94] ss:$8 sps:$4 sm:$0xff]   ;;  %v2313_v56 = vld [vmem:[%s3730_s6 + $0x90] ss:$8 sps:$4 sm:$0xff]  }
  0x14   :  { %v2318_v57 = vld [vmem:[%s3730_s6 + $0x84] ss:$8 sps:$4 sm:$0xff]   ;;  %v2316_v60 = vld [vmem:[%s3730_s6 + $0x80] ss:$8 sps:$4 sm:$0xff]  }
  0x16   :  { %2046 = vmatmul.mubr.msk.f32.gmra.mxu0 %vm86_vm0, %v2719_v16  ;;  %2054 = vmatmul.mubr.msk.f32.gmra.mxu1 %vm86_vm0, %v2724_v17 }
  0x17   :  { %194 = vmatprep.mubr.f32.mxu0 %v2563_v1  ;;  %242 = vmatprep.mubr.f32.mxu1 %v2563_v1 }
  0x1a   :  { %2047 = vmatmul.mubr.msk.f32.gmra.mxu0 %vm86_vm0, %v2735_v18  ;;  %2055 = vmatmul.mubr.msk.f32.gmra.mxu1 %vm86_vm0, %v2740_v19 }
  0x1b   :  { %200 = vmatprep.mubr.f32.mxu0 %v2563_v1  ;;  %248 = vmatprep.mubr.f32.mxu1 %v2563_v1 }
  0x1e   :  { %2048 = vmatmul.mubr.msk.f32.gmra.mxu0 %vm86_vm0, %v2751_v20  ;;  %2056 = vmatmul.mubr.msk.f32.gmra.mxu1 %vm86_vm0, %v2756_v21 }
  0x1f   :  { %206 = vmatprep.mubr.f32.mxu0 %v2563_v1  ;;  %287 = vmatprep.mubr.f32.mxu1 %v2563_v1 }
  0x22   :  { %2049 = vmatmul.mubr.msk.f32.gmra.mxu0 %vm86_vm0, %v2767_v22  ;;  %2057 = vmatmul.mubr.msk.f32.vlgmr.msra.gmra.mxu1 %vm86_vm0, %v2640_v3 }
  0x23   :  { %539 = vmatpush1.bf16.msra.mxu1 %v2265_v23  ;;  %293 = vmatprep.mubr.f32.mxu1 %v2563_v1 }
  0x24   :  { %433 = vmatprep.mubr.f32.mxu0 %v2563_v1  ;;  %1320 = vmatprep.subr.bf16.mxu1 %v2270_v25 }
  0x26   :  { %2058 = vmatmul.mubr.msk.f32.gmra.mxu1 %vm86_vm0, %v2661_v7  ;;  %2076 = vmatmul.mubr.msk.f32.vlgmr.msra.gmra.mxu0 %vm86_vm0, %v42_v24 }
  0x27   :  { %299 = vmatprep.mubr.f32.mxu1 %v2563_v1  ;;  %439 = vmatprep.mubr.f32.mxu0 %v2563_v1 }
  0x28   :  { %1008 = vmatpush1.bf16.msra.mxu0 %v2271_v31 }
  0x2a   :  { %2059 = vmatmul.mubr.msk.f32.gmra.mxu1 %vm86_vm0, %v2687_v12  ;;  %2077 = vmatmul.mubr.msk.f32.gmra.mxu0 %vm86_vm0, %v2640_v3 }
  0x2b   :  { %305 = vmatprep.mubr.f32.mxu1 %v2563_v1  ;;  %445 = vmatprep.mubr.f32.mxu0 %v2563_v1 }
  0x2e   :  { %2060 = vmatmul.mubr.msk.f32.gmra.mxu1 %vm86_vm0, %v2703_v14  ;;  %2078 = vmatmul.mubr.msk.f32.gmra.mxu0 %vm86_vm0, %v2661_v7 }
  0x2f   :  { %311 = vmatprep.mubr.f32.mxu1 %v2563_v1  ;;  %451 = vmatprep.mubr.f32.mxu0 %v2563_v1 }
  0x32   :  { %2061 = vmatmul.mubr.msk.f32.gmra.mxu1 %vm86_vm0, %v2719_v16  ;;  %2079 = vmatmul.mubr.msk.f32.gmra.mxu0 %vm86_vm0, %v2687_v12 }
  0x33   :  { %317 = vmatprep.mubr.f32.mxu1 %v2563_v1  ;;  %457 = vmatprep.mubr.f32.mxu0 %v2563_v1 }
  0x36   :  { %2062 = vmatmul.mubr.msk.f32.gmra.mxu1 %vm86_vm0, %v2735_v18  ;;  %2080 = vmatmul.mubr.msk.f32.gmra.mxu0 %vm86_vm0, %v2703_v14 }
  0x37   :  { %323 = vmatprep.mubr.f32.mxu1 %v2563_v1  ;;  %463 = vmatprep.mubr.f32.mxu0 %v2563_v1 }
  0x3a   :  { %2063 = vmatmul.mubr.msk.f32.gmra.mxu1 %vm86_vm0, %v2751_v20  ;;  %2081 = vmatmul.mubr.msk.f32.gmra.mxu0 %vm86_vm0, %v2719_v16 }
  0x3b   :  { %329 = vmatprep.mubr.f32.mxu1 %v2563_v1  ;;  %469 = vmatprep.mubr.f32.mxu0 %v2563_v1 }
  0x3e   :  { %2064 = vmatmul.mubr.msk.f32.gmra.mxu1 %vm86_vm0, %v2767_v22  ;;  %2082 = vmatmul.mubr.msk.f32.gmra.mxu0 %vm86_vm0, %v2735_v18 }
  0x3f   :  { %335 = vmatprep.mubr.f32.mxu1 %v2563_v1  ;;  %475 = vmatprep.mubr.f32.mxu0 %v2563_v1 }
  0x42   :  { %2065 = vmatmul.mubr.msk.f32.gmra.mxu1 %vm86_vm0, %v2645_v4  ;;  %2083 = vmatmul.mubr.msk.f32.gmra.mxu0 %vm86_vm0, %v2751_v20 }
  0x43   :  { %341 = vmatprep.mubr.f32.mxu1 %v2563_v1  ;;  %481 = vmatprep.mubr.f32.mxu0 %v2563_v1 }
  0x46   :  { %2066 = vmatmul.mubr.msk.f32.gmra.mxu1 %vm86_vm0, %v2666_v8  ;;  %2084 = vmatmul.mubr.msk.f32.gmra.mxu0 %vm86_vm0, %v2767_v22 }
  0x47   :  { %347 = vmatprep.mubr.f32.mxu1 %v2563_v1  ;;  %487 = vmatprep.mubr.f32.mxu0 %v2563_v1 }
  0x4a   :  { %2067 = vmatmul.mubr.msk.f32.gmra.mxu1 %vm86_vm0, %v2692_v13  ;;  %2085 = vmatmul.mubr.msk.f32.gmra.mxu0 %vm86_vm0, %v2645_v4 }
  0x4b   :  { %353 = vmatprep.mubr.f32.mxu1 %v2563_v1  ;;  %493 = vmatprep.mubr.f32.mxu0 %v2563_v1 }
  0x4e   :  { %2068 = vmatmul.mubr.msk.f32.gmra.mxu1 %vm86_vm0, %v2708_v15  ;;  %2086 = vmatmul.mubr.msk.f32.gmra.mxu0 %vm86_vm0, %v2666_v8 }
  0x4f   :  { %359 = vmatprep.mubr.f32.mxu1 %v2563_v1  ;;  %499 = vmatprep.mubr.f32.mxu0 %v2563_v1 }
  0x52   :  { %2069 = vmatmul.mubr.msk.f32.gmra.mxu1 %vm86_vm0, %v2724_v17  ;;  %2087 = vmatmul.mubr.msk.f32.gmra.mxu0 %vm86_vm0, %v2692_v13 }
  0x53   :  { %365 = vmatprep.mubr.f32.mxu1 %v2563_v1  ;;  %505 = vmatprep.mubr.f32.mxu0 %v2563_v1 }
  0x56   :  { %2070 = vmatmul.mubr.msk.f32.gmra.mxu1 %vm86_vm0, %v2740_v19  ;;  %2088 = vmatmul.mubr.msk.f32.gmra.mxu0 %vm86_vm0, %v2708_v15 }
  0x57   :  { %371 = vmatprep.mubr.f32.mxu1 %v2563_v1  ;;  %511 = vmatprep.mubr.f32.mxu0 %v2563_v1 }
  0x5a   :  { %2071 = vmatmul.mubr.msk.f32.gmra.mxu1 %vm86_vm0, %v2756_v21  ;;  %2089 = vmatmul.mubr.msk.f32.gmra.mxu0 %vm86_vm0, %v2724_v17 }
  0x5b   :  { %517 = vmatprep.mubr.f32.mxu0 %v2563_v1  ;;  %556 = vmatprep.mubr.f32.mxu1 %v2563_v1 }
  0x5e   :  { %2090 = vmatmul.mubr.msk.f32.gmra.mxu0 %vm86_vm0, %v2740_v19  ;;  %2091 = vmatmul.mubr.msk.f32.vlgmr.msra.gmra.mxu1 %vm86_vm0, %v42_v24 }
  0x5f   :  { %562 = vmatprep.mubr.f32.mxu1 %v2563_v1  ;;  %1025 = vmatprep.mubr.f32.mxu0 %v2563_v1 }
  0x60   :  { %1321 = vmatpush1.bf16.msra.mxu1 %v2268_v26 }
  0x61   :  { %1322 = vmatprep.subr.bf16.mxu1 %v2276_v27 }
  0x62   :  { %2092 = vmatmul.mubr.msk.f32.gmra.mxu1 %vm86_vm0, %v2640_v3  ;;  %2138 = vmatmul.mubr.msk.f32.vlgmr.msra.gmra.mxu0 %vm86_vm0, %v2640_v3 }
  0x63   :  { %568 = vmatprep.mubr.f32.mxu1 %v2563_v1  ;;  %1031 = vmatprep.mubr.f32.mxu0 %v2563_v1 }
  0x64   :  { %1323 = vmatpush1.bf16.msra.mxu1 %v2274_v28 }
  0x65   :  { %1324 = vmatprep.subr.bf16.mxu1 %v2279_v29 }
  0x66   :  { %2093 = vmatmul.mubr.msk.f32.gmra.mxu1 %vm86_vm0, %v2661_v7  ;;  %2139 = vmatmul.mubr.msk.f32.gmra.mxu0 %vm86_vm0, %v2661_v7 }
  0x67   :  { %574 = vmatprep.mubr.f32.mxu1 %v2563_v1  ;;  %1037 = vmatprep.mubr.f32.mxu0 %v2563_v1 }
  0x68   :  { %1325 = vmatpush1.bf16.msra.mxu1 %v2277_v30 }
  0x69   :  { %1326 = vmatprep.subr.bf16.mxu1 %v2282_v34 }
  0x6a   :  { %2094 = vmatmul.mubr.msk.f32.gmra.mxu1 %vm86_vm0, %v2687_v12  ;;  %2140 = vmatmul.mubr.msk.f32.gmra.mxu0 %vm86_vm0, %v2687_v12 }
  0x6b   :  { %580 = vmatprep.mubr.f32.mxu1 %v2563_v1  ;;  %1043 = vmatprep.mubr.f32.mxu0 %v2563_v1 }
  0x6c   :  { %1327 = vmatpush1.bf16.msra.mxu1 %v2280_v33 }
  0x6d   :  { %1328 = vmatprep.subr.bf16.mxu1 %v2285_v35 }
  0x6e   :  { %2095 = vmatmul.mubr.msk.f32.gmra.mxu1 %vm86_vm0, %v2703_v14  ;;  %2141 = vmatmul.mubr.msk.f32.gmra.mxu0 %vm86_vm0, %v2703_v14 }
  0x6f   :  { %586 = vmatprep.mubr.f32.mxu1 %v2563_v1  ;;  %1049 = vmatprep.mubr.f32.mxu0 %v2563_v1 }
  0x70   :  { %1329 = vmatpush1.bf16.msra.mxu1 %v2283_v36 }
  0x71   :  { %1330 = vmatprep.subr.bf16.mxu1 %v2288_v37 }
  0x72   :  { %2096 = vmatmul.mubr.msk.f32.gmra.mxu1 %vm86_vm0, %v2719_v16  ;;  %2142 = vmatmul.mubr.msk.f32.gmra.mxu0 %vm86_vm0, %v2719_v16 }
  0x73   :  { %592 = vmatprep.mubr.f32.mxu1 %v2563_v1  ;;  %1055 = vmatprep.mubr.f32.mxu0 %v2563_v1 }
  0x74   :  { %1331 = vmatpush1.bf16.msra.mxu1 %v2286_v38 }
  0x75   :  { %1332 = vmatprep.subr.bf16.mxu1 %v2291_v39 }
  0x76   :  { %2097 = vmatmul.mubr.msk.f32.gmra.mxu1 %vm86_vm0, %v2735_v18  ;;  %2143 = vmatmul.mubr.msk.f32.gmra.mxu0 %vm86_vm0, %v2735_v18 }
  0x77   :  { %598 = vmatprep.mubr.f32.mxu1 %v2563_v1  ;;  %1061 = vmatprep.mubr.f32.mxu0 %v2563_v1 }
  0x78   :  { %1333 = vmatpush1.bf16.msra.mxu1 %v2289_v40 }
  0x79   :  { %1334 = vmatprep.subr.bf16.mxu1 %v2294_v41 }
  0x7a   :  { %2098 = vmatmul.mubr.msk.f32.gmra.mxu1 %vm86_vm0, %v2751_v20  ;;  %2144 = vmatmul.mubr.msk.f32.gmra.mxu0 %vm86_vm0, %v2751_v20 }
  0x7b   :  { %604 = vmatprep.mubr.f32.mxu1 %v2563_v1  ;;  %1067 = vmatprep.mubr.f32.mxu0 %v2563_v1 }
  0x7c   :  { %1335 = vmatpush1.bf16.msra.mxu1 %v2292_v42 }
  0x7d   :  { %1336 = vmatprep.subr.bf16.mxu1 %v2297_v43 }
  0x7e   :  { %2099 = vmatmul.mubr.msk.f32.gmra.mxu1 %vm86_vm0, %v2767_v22  ;;  %2145 = vmatmul.mubr.msk.f32.gmra.mxu0 %vm86_vm0, %v2767_v22 }
  0x7f   :  { %610 = vmatprep.mubr.f32.mxu1 %v2563_v1  ;;  %1073 = vmatprep.mubr.f32.mxu0 %v2563_v1 }
  0x80   :  { %1337 = vmatpush2.bf16.msra.mxu1 %v2295_v44 }
  0x81   :  { %1338 = vmatprep.subr.bf16.mxu1 %v2300_v45 }
  0x82   :  { %2100 = vmatmul.mubr.msk.f32.gmra.mxu1 %vm86_vm0, %v2645_v4  ;;  %2146 = vmatmul.mubr.msk.f32.gmra.mxu0 %vm86_vm0, %v2645_v4 }
  0x83   :  { %616 = vmatprep.mubr.f32.mxu1 %v2563_v1  ;;  %1079 = vmatprep.mubr.f32.mxu0 %v2563_v1 }
  0x84   :  { %1339 = vmatpush2.bf16.msra.mxu1 %v2298_v46 }
  0x85   :  { %1340 = vmatprep.subr.bf16.mxu1 %v2303_v47 }
  0x86   :  { %2101 = vmatmul.mubr.msk.f32.gmra.mxu1 %vm86_vm0, %v2666_v8  ;;  %2147 = vmatmul.mubr.msk.f32.gmra.mxu0 %vm86_vm0, %v2666_v8 }
  0x87   :  { %622 = vmatprep.mubr.f32.mxu1 %v2563_v1  ;;  %1085 = vmatprep.mubr.f32.mxu0 %v2563_v1 }
  0x88   :  { %1341 = vmatpush2.bf16.msra.mxu1 %v2301_v48 }
  0x89   :  { %1342 = vmatprep.subr.bf16.mxu1 %v2306_v49 }
  0x8a   :  { %2102 = vmatmul.mubr.msk.f32.gmra.mxu1 %vm86_vm0, %v2692_v13  ;;  %2148 = vmatmul.mubr.msk.f32.gmra.mxu0 %vm86_vm0, %v2692_v13 }
  0x8b   :  { %628 = vmatprep.mubr.f32.mxu1 %v2563_v1  ;;  %1091 = vmatprep.mubr.f32.mxu0 %v2563_v1 }
  0x8c   :  { %1343 = vmatpush2.bf16.msra.mxu1 %v2304_v50 }
  0x8d   :  { %1344 = vmatprep.subr.bf16.mxu1 %v2309_v51 }
  0x8e   :  { %2103 = vmatmul.mubr.msk.f32.gmra.mxu1 %vm86_vm0, %v2708_v15  ;;  %2149 = vmatmul.mubr.msk.f32.gmra.mxu0 %vm86_vm0, %v2708_v15 }
  0x8f   :  { %634 = vmatprep.mubr.f32.mxu1 %v2563_v1  ;;  %1097 = vmatprep.mubr.f32.mxu0 %v2563_v1 }
  0x90   :  { %1345 = vmatpush2.bf16.msra.mxu1 %v2307_v52 }
  0x91   :  { %1346 = vmatprep.subr.bf16.mxu1 %v2312_v53 }
  0x92   :  { %2104 = vmatmul.mubr.msk.f32.gmra.mxu1 %vm86_vm0, %v2724_v17  ;;  %2150 = vmatmul.mubr.msk.f32.gmra.mxu0 %vm86_vm0, %v2724_v17 }
  0x93   :  { %640 = vmatprep.mubr.f32.mxu1 %v2563_v1  ;;  %1103 = vmatprep.mubr.f32.mxu0 %v2563_v1 }
  0x94   :  { %1347 = vmatpush2.bf16.msra.mxu1 %v2310_v54 }
  0x95   :  { %1348 = vmatprep.subr.bf16.mxu1 %v2315_v55 }
  0x96   :  { %2105 = vmatmul.mubr.msk.f32.gmra.mxu1 %vm86_vm0, %v2740_v19  ;;  %2151 = vmatmul.mubr.msk.f32.gmra.mxu0 %vm86_vm0, %v2740_v19 }
  0x97   :  { %1109 = vmatprep.mubr.f32.mxu0 %v2563_v1 }
  0x98   :  { %1349 = vmatpush2.bf16.msra.mxu1 %v2313_v56  ;;  %v649_v56 = vlaneseq }
  0x99   :  { %1350 = vmatprep.subr.bf16.mxu1 %v2318_v57  ;;  %v2319_v57 = vld [vmem:[%s3732_s8 + $0x70] ss:$8 sps:$4 sm:$0xff]  }
  0x9a   :  { %2152 = vmatmul.mubr.msk.f32.gmra.mxu0 %vm86_vm0, %v2756_v21 }
  0x9c   :  { %1351 = vmatpush2.bf16.msra.mxu1 %v2316_v60 }
  0xc6   :  { %v3044_v58 = vpop.f32.mrf.mxu0  ;;  %v3046_v59 = vpop.f32.mrf.mxu1 }
  0xc8   :  { %v3052_v61 = vpop.f32.mrf.mxu0  ;;  %v3054_v62 = vpop.f32.mrf.mxu1 }
  0xca   :  { %v3058_v63 = vpop.f32.mrf.mxu0  ;;  %v3060_v0 = vpop.f32.mrf.mxu1 }
  0xcc   :  { %v3063_v2 = vpop.f32.mrf.mxu0  ;;  %v3065_v3 = vpop.f32.mrf.mxu1 }
  0xce   :  { %v3069_v4 = vpop.f32.mrf.mxu0  ;;  %v3071_v5 = vpop.f32.mrf.mxu1 }
  0xd0   :  { %v3074_v6 = vpop.f32.mrf.mxu0  ;;  %v3076_v7 = vpop.f32.mrf.mxu1 }
  0xd2   :  { %v3080_v8 = vpop.f32.mrf.mxu0  ;;  %v3082_v9 = vpop.f32.mrf.mxu1 }
  0xd4   :  { %v3084_v10 = vpop.f32.mrf.mxu0  ;;  %v3086_v11 = vpop.f32.mrf.mxu1 }
  0xd6   :  { %v3088_v12 = vpop.f32.mrf.mxu0  ;;  %v3090_v13 = vpop.f32.mrf.mxu1 }
  0xd7   :  { %3744 = vst [vmem:[#allocation2_spill] sm:$0xff] %v3090_v13  ;;  %v2322_v13 = vld [vmem:[%s3732_s8 + $0x60] ss:$8 sps:$4 sm:$0xff]  }
  0xd8   :  { %v3092_v1 = vpop.f32.mrf.mxu0  ;;  %v3094_v14 = vpop.f32.mrf.mxu1 }
  0xd9   :  { %3745 = vst [vmem:[#allocation3_spill] sm:$0xff] %v3094_v14  ;;  %v3179_v14 = vshrl.u32 %v649_v56, 7 }
  0xda   :  { %v3096_v15 = vpop.f32.mrf.mxu0  ;;  %v3098_v16 = vpop.f32.mrf.mxu1 }
  0xdb   :  { %3746 = vst [vmem:[#allocation4_spill] sm:$0xff] %v3098_v16 }
  0xdc   :  { %v3100_v17 = vpop.f32.mrf.mxu0  ;;  %v3102_v18 = vpop.f32.mrf.mxu1 }
  0xdd   :  { %3747 = vst [vmem:[#allocation5_spill] sm:$0xff] %v3102_v18  ;;  %v2324_v18 = vld [vmem:[%s3732_s8 + $0x64] ss:$8 sps:$4 sm:$0xff]  }
  0xde   :  { %v3104_v19 = vpop.f32.mrf.mxu0  ;;  %v3106_v20 = vpop.f32.mrf.mxu1 }
  0xdf   :  { %3748 = vst [vmem:[#allocation6_spill] sm:$0xff] %v3106_v20 }
  0xe0   :  { %v3108_v21 = vpop.f32.mrf.mxu0  ;;  %v3110_v22 = vpop.f32.mrf.mxu1 }
  0xe1   :  { %3749 = vst [vmem:[#allocation7_spill] sm:$0xff] %v3110_v22  ;;  %v2321_v22 = vld [vmem:[%s3732_s8 + $0x74] ss:$8 sps:$4 sm:$0xff]  }
  0xe2   :  { %v3112_v23 = vpop.f32.mrf.mxu0  ;;  %v3114_v24 = vpop.f32.mrf.mxu1  ;;  %1677 = vmatprep.subr.bf16.mxu0 %v2321_v22  ;;  %v3194_v22 = vld [vmem:[%s3733_s5] sm:$0xf] }
  0xe3   :  { %1678 = vmatpush1.bf16.msra.mxu0 %v2319_v57  ;;  %v3199_v57 = vsub.s32 0, %v3179_v14 }
  0xe4   :  { %v3116_v25 = vpop.f32.mrf.mxu0  ;;  %v3118_v26 = vpop.f32.mrf.mxu1  ;;  %1679 = vmatprep.subr.bf16.mxu0 %v2324_v18  ;;  %v2325_v18 = vld [vmem:[%s3732_s8 + $0x50] ss:$8 sps:$4 sm:$0xff]  }
  0xe5   :  { %3761 = vst [vmem:[#allocation19_spill] sm:$0xff] %v3199_v57 }
  0xe6   :  { %v3120_v27 = vpop.f32.mrf.mxu1  ;;  %v435_v28 = vpop.f32.mrf.mxu0 }
  0xe7   :  { %1680 = vmatpush1.bf16.msra.mxu0 %v2322_v13 }
  0xe8   :  { %v3122_v29 = vpop.f32.mrf.mxu1  ;;  %v437_v30 = vpop.f32.mrf.mxu0 }
  0xe9   :  { %v438_v13 = vadd.f32 %v437_v30, %v3052_v61  ;;  %v2333_v30 = vld [vmem:[%s3732_s8 + $0x34] ss:$8 sps:$4 sm:$0xff]  }
  0xea   :  { %v3124_v31 = vpop.f32.mrf.mxu1  ;;  %v441_v32 = vpop.f32.mrf.mxu0 }
  0xec   :  { %v3126_v33 = vpop.f32.mrf.mxu1  ;;  %v443_v34 = vpop.f32.mrf.mxu0 }
  0xee   :  { %v3128_v35 = vpop.f32.mrf.mxu1  ;;  %v447_v36 = vpop.f32.mrf.mxu0 }
  0xf0   :  { %v3130_v37 = vpop.f32.mrf.mxu1  ;;  %v449_v38 = vpop.f32.mrf.mxu0 }
  0xf2   :  { %v3132_v39 = vpop.f32.mrf.mxu1  ;;  %v453_v40 = vpop.f32.mrf.mxu0 }
  0xf4   :  { %v3134_v41 = vpop.f32.mrf.mxu1  ;;  %v3136_v42 = vpop.f32.mrf.mxu0 }
  0xf6   :  { %v3138_v43 = vpop.f32.mrf.mxu1  ;;  %v3140_v44 = vpop.f32.mrf.mxu0 }
  0xf7   :  { %3750 = vst [vmem:[#allocation8_spill] sm:$0xff] %v3138_v43  ;;  %v442_v43 = vadd.f32 %v441_v32, %v3058_v63  ;;  %v448_v32 = vadd.f32 %v447_v36, %v3069_v4  ;;  %v456_v4 = vadd.f32 %v3136_v42, %v3084_v10 }
  0xf8   :  { %v3142_v45 = vpop.f32.mrf.mxu1  ;;  %v3144_v46 = vpop.f32.mrf.mxu0 }
  0xf9   :  { %3751 = vst [vmem:[#allocation9_spill] sm:$0xff] %v3142_v45  ;;  %v3220_v45 = vrot.slane %v3194_v22, %v3199_v57  ;;  %v462_v10 = vadd.f32 %v3144_v46, %v3092_v1  ;;  %v2339_v46 = vld [vmem:[%s3732_s8 + $0x14] ss:$8 sps:$4 sm:$0xff]  }
  0xfa   :  { %v3146_v47 = vpop.f32.mrf.mxu1  ;;  %v3148_v48 = vpop.f32.mrf.mxu0 }
  0xfb   :  { %3752 = vst [vmem:[#allocation10_spill] sm:$0xff] %v3146_v47 }
  0xfc   :  { %v3150_v49 = vpop.f32.mrf.mxu1  ;;  %v3152_v50 = vpop.f32.mrf.mxu0 }
  0xfd   :  { %3753 = vst [vmem:[#allocation11_spill] sm:$0xff] %v3150_v49 }
  0xfe   :  { %v3154_v51 = vpop.f32.mrf.mxu1  ;;  %v3156_v52 = vpop.f32.mrf.mxu0 }
  0xff   :  { %3754 = vst [vmem:[#allocation12_spill] sm:$0xff] %v3154_v51  ;;  %v2330_v51 = vld [vmem:[%s3732_s8 + $0x44] ss:$8 sps:$4 sm:$0xff]  }
 0x100   :  { %v3158_v53 = vpop.f32.mrf.mxu1  ;;  %v3160_v54 = vpop.f32.mrf.mxu0 }
 0x101   :  { %3755 = vst [vmem:[#allocation13_spill] sm:$0xff] %v3158_v53 }
 0x102   :  { %v3162_v55 = vpop.f32.mrf.mxu1  ;;  %v3172_v20 = vpop.f32.mrf.mxu0 }
 0x103   :  { %3756 = vst [vmem:[#allocation14_spill] sm:$0xff] %v3162_v55  ;;  %v2327_v55 = vld [vmem:[%s3732_s8 + $0x54] ss:$8 sps:$4 sm:$0xff]  }
 0x104   :  { %v3167_v60 = vpop.f32.mrf.mxu1  ;;  %v3189_v53 = vpop.f32.mrf.mxu0  ;;  %1681 = vmatprep.subr.bf16.mxu0 %v2327_v55  ;;  %v2328_v55 = vld [vmem:[%s3732_s8 + $0x40] ss:$8 sps:$4 sm:$0xff]  }
 0x105   :  { %3757 = vst [vmem:[#allocation15_spill] sm:$0xff] %v3167_v60  ;;  %1682 = vmatpush1.bf16.msra.mxu0 %v2325_v18 }
 0x106   :  { %v3177_v16 = vpop.f32.mrf.mxu1  ;;  %v3213_v49 = vpop.f32.mrf.mxu0  ;;  %1683 = vmatprep.subr.bf16.mxu0 %v2330_v51  ;;  %v2331_v51 = vld [vmem:[%s3732_s8 + $0x30] ss:$8 sps:$4 sm:$0xff]  }
 0x107   :  { %3758 = vst [vmem:[#allocation16_spill] sm:$0xff] %v3177_v16 }
 0x108   :  { %v3184_v60 = vpop.f32.mrf.mxu1  ;;  %v3238_v18 = vpop.f32.mrf.mxu0 }
 0x109   :  { %3759 = vst [vmem:[#allocation17_spill] sm:$0xff] %v3184_v60  ;;  %v3205_v60 = vsub.s32 1, %v3179_v14  ;;  %1684 = vmatpush1.bf16.msra.mxu0 %v2328_v55  ;;  %v466_v55 = vadd.f32 %v3148_v48, %v3096_v15  ;;  %v472_v48 = vadd.f32 %v3156_v52, %v3104_v19  ;;  %v2337_v19 = vld [vmem:[%s3732_s8 + $0x10] ss:$8 sps:$4 sm:$0xff]  }
 0x10a   :  { %v3196_v56 = vpop.f32.mrf.mxu1  ;;  %1685 = vmatprep.subr.bf16.mxu0 %v2333_v30 }
 0x10b   :  { %3760 = vst [vmem:[#allocation18_spill] sm:$0xff] %v3196_v56  ;;  %3762 = vst [vmem:[#allocation20_spill] sm:$0xff] %v3205_v60  ;;  %v436_v56 = vadd.f32 %v435_v28, %v3044_v58  ;;  %v3228_v58 = vrot.slane %v3194_v22, %v3205_v60  ;;  %v444_v28 = vadd.f32 %v443_v34, %v3063_v2 }
 0x10c   :  { %v3207_v16 = vpop.f32.mrf.mxu1  ;;  %v450_v60 = vadd.f32 %v449_v38, %v3074_v6  ;;  %v673_v2 = vadd.f32 %v3220_v45, %v442_v43  ;;  %v454_v34 = vadd.f32 %v453_v40, %v3080_v8  ;;  %v2336_v6 = vld [vmem:[%s3732_s8 + $0x24] ss:$8 sps:$4 sm:$0xff]   ;;  %v677_v8 = vadd.f32 %v3220_v45, %v448_v32  ;;  %v3260_v40 = vpop.f32.mrf.mxu0 }
 0x10d   :  { %v669_v63 = vadd.f32 %v3220_v45, %v436_v56  ;;  %v670_v57 = vadd.f32 %v3228_v58, %v438_v13  ;;  %v674_v56 = vadd.f32 %v3228_v58, %v444_v28  ;;  %v460_v38 = vadd.f32 %v3140_v44, %v3088_v12  ;;  %1686 = vmatpush1.bf16.msra.mxu0 %v2331_v51  ;;  %v2334_v12 = vld [vmem:[%s3732_s8 + $0x20] ss:$8 sps:$4 sm:$0xff]  }
 0x10e   :  { %v3216_v47 = vpop.f32.mrf.mxu1  ;;  %v678_v43 = vadd.f32 %v3228_v58, %v450_v60  ;;  %v681_v13 = vadd.f32 %v3220_v45, %v454_v34  ;;  %v682_v44 = vadd.f32 %v3228_v58, %v456_v4  ;;  %v468_v60 = vadd.f32 %v3152_v50, %v3100_v17  ;;  %1687 = vmatprep.subr.bf16.mxu0 %v2336_v6 }
 0x10f   :  { %3763 = vst [vmem:[#allocation21_spill] sm:$0xff] %v3216_v47  ;;  %2383 = vtanh.f32 %v669_v63  ;;  %v685_v15 = vadd.f32 %v3220_v45, %v460_v38  ;;  %v659_v28 = vsub.s32 2, %v3179_v14  ;;  %v686_v30 = vadd.f32 %v3228_v58, %v462_v10 }
 0x110   :  { %v3231_v61 = vpop.f32.mrf.mxu1  ;;  %2385 = vtanh.f32 %v670_v57  ;;  %v491_v57 = vpop.f32.mrf.mxu0  ;;  %v474_v17 = vadd.f32 %v3160_v54, %v3108_v21  ;;  %v689_v63 = vadd.f32 %v3220_v45, %v466_v55  ;;  %v478_v32 = vadd.f32 %v3172_v20, %v3112_v23  ;;  %v2342_v20 = vld [vmem:[%s3732_s8 + $0x4] ss:$8 sps:$4 sm:$0xff]  }
 0x111   :  { %2387 = vtanh.f32 %v673_v2  ;;  %1688 = vmatpush1.bf16.msra.mxu0 %v2334_v12  ;;  %v690_v52 = vadd.f32 %v3228_v58, %v468_v60  ;;  %v480_v2 = vadd.f32 %v3189_v53, %v3116_v25  ;;  %v663_v54 = vsub.s32 3, %v3179_v14 }
 0x112   :  { %v3242_v47 = vpop.f32.mrf.mxu1  ;;  %2389 = vtanh.f32 %v674_v56  ;;  %1689 = vmatprep.subr.bf16.mxu0 %v2339_v46  ;;  %v693_v23 = vadd.f32 %v3220_v45, %v472_v48  ;;  %v495_v34 = vpop.f32.mrf.mxu0  ;;  %v3307_v51 = vrot.slane %v3194_v22, %v659_v28  ;;  %v694_v56 = vadd.f32 %v3228_v58, %v474_v17  ;;  %v2348_v28 = vld [vmem:[%s3732_s8 + $0xe4] ss:$8 sps:$4 sm:$0xff]  }
 0x113   :  { %2391 = vtanh.f32 %v677_v8  ;;  %v484_v25 = vadd.f32 %v3213_v49, %v3046_v59  ;;  %v697_v14 = vadd.f32 %v3220_v45, %v478_v32  ;;  %v486_v4 = vadd.f32 %v3238_v18, %v3054_v62  ;;  %v2340_v8 = vld [vmem:[%s3732_s8] ss:$8 sps:$4 sm:$0xff]   ;;  %v2345_v49 = vld [vmem:[%s3732_s8 + $0xf4] ss:$8 sps:$4 sm:$0xff]  }
 0x114   :  { %v3252_v36 = vpop.f32.mrf.mxu1  ;;  %2393 = vtanh.f32 %v678_v43  ;;  %v698_v38 = vadd.f32 %v3228_v58, %v480_v2  ;;  %v3321_v59 = vrot.slane %v3194_v22, %v663_v54  ;;  %v497_v62 = vpop.f32.mrf.mxu0 }
 0x115   :  { %2395 = vtanh.f32 %v681_v13  ;;  %1690 = vmatpush1.bf16.msra.mxu0 %v2337_v19  ;;  %v701_v10 = vadd.f32 %v3220_v45, %v484_v25  ;;  %v490_v13 = vadd.f32 %v3260_v40, %v3060_v0  ;;  %v492_v0 = vadd.f32 %v491_v57, %v3065_v3 }
 0x116   :  { %v3265_v42 = vpop.f32.mrf.mxu1  ;;  %2397 = vtanh.f32 %v682_v44  ;;  %1691 = vmatprep.subr.bf16.mxu0 %v2342_v20  ;;  %v702_v44 = vadd.f32 %v3228_v58, %v486_v4  ;;  %v496_v57 = vadd.f32 %v495_v34, %v3071_v5  ;;  %v498_v5 = vadd.f32 %v497_v62, %v3076_v7 }
 0x117   :  { %2399 = vtanh.f32 %v685_v15  ;;  %v2343_v15 = vld [vmem:[%s3732_s8 + $0xf0] ss:$8 sps:$4 sm:$0xff]   ;;  %v705_v3 = vadd.f32 %v3220_v45, %v490_v13  ;;  %v706_v25 = vadd.f32 %v3228_v58, %v492_v0 }
 0x118   :  { %v3276_v1 = vpop.f32.mrf.mxu1  ;;  %2401 = vtanh.f32 %v686_v30  ;;  %v709_v7 = vadd.f32 %v3220_v45, %v496_v57 }
 0x119   :  { %2403 = vtanh.f32 %v689_v63  ;;  %1692 = vmatpush1.bf16.msra.mxu0 %v2340_v8 }
 0x11a   :  { %v3288_v50 = vpop.f32.mrf.mxu1  ;;  %2405 = vtanh.f32 %v690_v52  ;;  %1693 = vmatprep.subr.bf16.mxu0 %v2345_v49 }
 0x11b   :  { %2407 = vtanh.f32 %v693_v23 }
 0x11c   :  { %v3299_v21 = vpop.f32.mrf.mxu1  ;;  %v3327_v18 = vpop.eup %2383  ;;  %2409 = vtanh.f32 %v694_v56 }
 0x11d   :  { %v3333_v12 = vpop.eup %2385  ;;  %2411 = vtanh.f32 %v697_v14  ;;  %1694 = vmatpush2.bf16.msra.mxu0 %v2343_v15 }
 0x11e   :  { %v558_v53 = vpop.f32.mrf.mxu1  ;;  %v3340_v48 = vpop.eup %2387  ;;  %2413 = vtanh.f32 %v698_v38  ;;  %1695 = vmatprep.subr.bf16.mxu0 %v2348_v28 }
 0x11f   :  { %v559_v6 = vadd.f32 %v558_v53, %v3114_v24  ;;  %v3347_v30 = vpop.eup %2389  ;;  %v2351_v53 = vld [vmem:[%s3732_s8 + $0xd4] ss:$8 sps:$4 sm:$0xff]  }
 0x120   :  { %v560_v43 = vpop.f32.mrf.mxu1  ;;  %v3351_v32 = vpop.eup %2391 }
 0x121   :  { %v671_v24 = vadd.f32 %v3307_v51, %v559_v6  ;;  %v561_v22 = vadd.f32 %v560_v43, %v3118_v26  ;;  %v3355_v2 = vpop.eup %2393 }
 0x122   :  { %v564_v55 = vpop.f32.mrf.mxu1  ;;  %v3362_v56 = vpop.eup %2395 }
 0x123   :  { %v2106_v60 = vmul.f32 -1.442695, %v671_v24  ;;  %v565_v46 = vadd.f32 %v564_v55, %v3120_v27  ;;  %v672_v26 = vadd.f32 %v3321_v59, %v561_v22  ;;  %v501_v27 = vpop.f32.mrf.mxu0  ;;  %v3369_v14 = vpop.eup %2397  ;;  %v710_v55 = vadd.f32 %v3228_v58, %v498_v5 }
 0x124   :  { %v566_v40 = vpop.f32.mrf.mxu1  ;;  %v3373_v38 = vpop.eup %2399  ;;  %v502_v43 = vadd.f32 %v501_v27, %v3082_v9 }
 0x125   :  { %2415 = vpow2.f32 %v2106_v60  ;;  %v675_v17 = vadd.f32 %v3307_v51, %v565_v46  ;;  %v567_v63 = vadd.f32 %v566_v40, %v3122_v29  ;;  %v2107_v19 = vmul.f32 -1.442695, %v672_v26  ;;  %v2346_v29 = vld [vmem:[%s3732_s8 + $0xe0] ss:$8 sps:$4 sm:$0xff]   ;;  %v3377_v62 = vpop.eup %2401  ;;  %v2354_v60 = vld [vmem:[%s3732_s8 + $0xc4] ss:$8 sps:$4 sm:$0xff]  }
 0x126   :  { %2417 = vtanh.f32 %v701_v10  ;;  %v570_v52 = vpop.f32.mrf.mxu1  ;;  %1696 = vmatpush2.bf16.msra.mxu0 %v2346_v29  ;;  %v3384_v22 = vpop.eup %2403  ;;  %v713_v40 = vadd.f32 %v3220_v45, %v502_v43  ;;  %v2360_v43 = vld [vmem:[%s3732_s8 + $0xa4] ss:$8 sps:$4 sm:$0xff]  }
 0x127   :  { %2419 = vtanh.f32 %v702_v44  ;;  %v2108_v54 = vmul.f32 -1.442695, %v675_v17  ;;  %v676_v20 = vadd.f32 %v3321_v59, %v567_v63  ;;  %v571_v23 = vadd.f32 %v570_v52, %v3124_v31  ;;  %v503_v31 = vpop.f32.mrf.mxu0  ;;  %1697 = vmatprep.subr.bf16.mxu0 %v2351_v53  ;;  %v3391_v46 = vpop.eup %2405  ;;  %v2357_v52 = vld [vmem:[%s3732_s8 + $0xb4] ss:$8 sps:$4 sm:$0xff]  }
 0x128   :  { %2421 = vpow2.f32 %v2107_v19  ;;  %v572_v34 = vpop.f32.mrf.mxu1  ;;  %v504_v9 = vadd.f32 %v503_v31, %v3086_v11  ;;  %v3395_v26 = vpop.eup %2407 }
 0x129   :  { %2423 = vpow2.f32 %v2108_v54  ;;  %v2109_v4 = vmul.f32 -1.442695, %v676_v20  ;;  %v679_v6 = vadd.f32 %v3307_v51, %v571_v23  ;;  %v573_v8 = vadd.f32 %v572_v34, %v3126_v33  ;;  %v2349_v33 = vld [vmem:[%s3732_s8 + $0xd0] ss:$8 sps:$4 sm:$0xff]   ;;  %v3398_v28 = vpop.eup %2409 }
 0x12a   :  { %2425 = vtanh.f32 %v705_v3  ;;  %v576_v49 = vpop.f32.mrf.mxu1  ;;  %1698 = vmatpush2.bf16.msra.mxu0 %v2349_v33  ;;  %v2352_v3 = vld [vmem:[%s3732_s8 + $0xc0] ss:$8 sps:$4 sm:$0xff]   ;;  %v714_v57 = vadd.f32 %v3228_v58, %v504_v9 }
 0x12b   :  { %2427 = vpow2.f32 %v2109_v4  ;;  %v2110_v24 = vmul.f32 -1.442695, %v679_v6  ;;  %v680_v10 = vadd.f32 %v3321_v59, %v573_v8  ;;  %v577_v13 = vadd.f32 %v576_v49, %v3128_v35  ;;  %1699 = vmatprep.subr.bf16.mxu0 %v2354_v60  ;;  %v2355_v4 = vld [vmem:[%s3732_s8 + $0xb0] ss:$8 sps:$4 sm:$0xff]  }
 0x12c   :  { %2429 = vtanh.f32 %v706_v25  ;;  %v578_v44 = vpop.f32.mrf.mxu1  ;;  %v3764_v8 = vld [vmem:[#allocation8_spill] sm:$0xff] }
 0x12d   :  { %2431 = vpow2.f32 %v2110_v24  ;;  %v2111_v35 = vmul.f32 -1.442695, %v680_v10  ;;  %v683_v15 = vadd.f32 %v3307_v51, %v577_v13  ;;  %v579_v0 = vadd.f32 %v578_v44, %v3130_v37  ;;  %v3405_v37 = vpop.eup %2411  ;;  %v3765_v10 = vld [vmem:[#allocation9_spill] sm:$0xff] }
 0x12e   :  { %2433 = vtanh.f32 %v709_v7  ;;  %v582_v11 = vpop.f32.mrf.mxu1  ;;  %v3411_v54 = vpop.eup %2413  ;;  %1700 = vmatpush2.bf16.msra.mxu0 %v2352_v3 }
 0x12f   :  { %2435 = vpow2.f32 %v2111_v35  ;;  %v2112_v27 = vmul.f32 -1.442695, %v683_v15  ;;  %v684_v17 = vadd.f32 %v3321_v59, %v579_v0  ;;  %v583_v63 = vadd.f32 %v582_v11, %v3132_v39  ;;  %1701 = vmatprep.subr.bf16.mxu0 %v2357_v52  ;;  %v3766_v0 = vld [vmem:[#allocation10_spill] sm:$0xff] }
 0x130   :  { %2437 = vtanh.f32 %v710_v55  ;;  %v584_v19 = vpop.f32.mrf.mxu1  ;;  %v2358_v11 = vld [vmem:[%s3732_s8 + $0xa0] ss:$8 sps:$4 sm:$0xff]  }
 0x131   :  { %2439 = vpow2.f32 %v2112_v27  ;;  %v2113_v39 = vmul.f32 -1.442695, %v684_v17  ;;  %v687_v20 = vadd.f32 %v3307_v51, %v583_v63  ;;  %v585_v23 = vadd.f32 %v584_v19, %v3134_v41 }
 0x132   :  { %v2416_v29 = vpop.eup %2415  ;;  %2441 = vtanh.f32 %v713_v40  ;;  %v588_v25 = vpop.f32.mrf.mxu1  ;;  %1702 = vmatpush2.bf16.msra.mxu0 %v2355_v4 }
 0x133   :  { %v3415_v5 = vpop.eup %2417  ;;  %v849_v34 = vadd.f32 1.0, %v2416_v29  ;;  %2443 = vpow2.f32 %v2113_v39  ;;  %v2114_v53 = vmul.f32 -1.442695, %v687_v20  ;;  %v688_v31 = vadd.f32 %v3321_v59, %v585_v23  ;;  %1703 = vmatprep.subr.bf16.mxu0 %v2360_v43  ;;  %v3767_v20 = vld [vmem:[#allocation11_spill] sm:$0xff] }
 0x134   :  { %v3421_v6 = vpop.eup %2419  ;;  %2445 = vtanh.f32 %v714_v57  ;;  %v589_v41 = vadd.f32 %v588_v25, %v3764_v8  ;;  %v590_v7 = vpop.f32.mrf.mxu1 }
 0x135   :  { %v2422_v49 = vpop.eup %2421  ;;  %2447 = vrcp.f32 %v849_v34  ;;  %v2115_v24 = vmul.f32 -1.442695, %v688_v31  ;;  %v591_v13 = vadd.f32 %v590_v7, %v3765_v10  ;;  %v3768_v31 = vld [vmem:[#allocation12_spill] sm:$0xff]  ;;  %v3769_v10 = vld [vmem:[#allocation13_spill] sm:$0xff] }
 0x136   :  { %v2424_v33 = vpop.eup %2423  ;;  %v850_v55 = vadd.f32 1.0, %v2422_v49  ;;  %2449 = vpow2.f32 %v2114_v53  ;;  %v691_v9 = vadd.f32 %v3307_v51, %v589_v41  ;;  %v594_v44 = vpop.f32.mrf.mxu1  ;;  %1704 = vmatpush2.bf16.msra.mxu0 %v2358_v11  ;;  %v3770_v11 = vld [vmem:[#allocation14_spill] sm:$0xff] }
 0x137   :  { %v3429_v60 = vpop.eup %2425  ;;  %v851_v35 = vadd.f32 1.0, %v2424_v33  ;;  %2451 = vpow2.f32 %v2115_v24  ;;  %v692_v15 = vadd.f32 %v3321_v59, %v591_v13  ;;  %v595_v40 = vadd.f32 %v594_v44, %v3766_v0 }
 0x138   :  { %v2428_v27 = vpop.eup %2427  ;;  %2453 = vrcp.f32 %v850_v55  ;;  %v2116_v17 = vmul.f32 -1.442695, %v691_v9  ;;  %v596_v63 = vpop.f32.mrf.mxu1 }
 0x139   :  { %v3436_v3 = vpop.eup %2429  ;;  %2455 = vrcp.f32 %v851_v35  ;;  %v852_v57 = vadd.f32 1.0, %v2428_v27  ;;  %v2117_v19 = vmul.f32 -1.442695, %v692_v15  ;;  %v695_v52 = vadd.f32 %v3307_v51, %v595_v40 }
 0x13a   :  { %v2432_v39 = vpop.eup %2431  ;;  %2457 = vpow2.f32 %v2116_v17  ;;  %v597_v23 = vadd.f32 %v596_v63, %v3767_v20  ;;  %v600_v29 = vpop.f32.mrf.mxu1 }
 0x13b   :  { %v3440_v25 = vpop.eup %2433  ;;  %2459 = vrcp.f32 %v852_v57  ;;  %v853_v34 = vadd.f32 1.0, %v2432_v39  ;;  %v2118_v53 = vmul.f32 -1.442695, %v695_v52  ;;  %v601_v4 = vadd.f32 %v600_v29, %v3768_v31  ;;  %v3771_v52 = vld [vmem:[#allocation15_spill] sm:$0xff]  ;;  %v3772_v31 = vld [vmem:[#allocation16_spill] sm:$0xff] }
 0x13c   :  { %v2436_v8 = vpop.eup %2435  ;;  %2461 = vpow2.f32 %v2117_v19  ;;  %v696_v41 = vadd.f32 %v3321_v59, %v597_v23  ;;  %v602_v7 = vpop.f32.mrf.mxu1 }
 0x13d   :  { %v3444_v43 = vpop.eup %2437  ;;  %2463 = vrcp.f32 %v853_v34  ;;  %v854_v49 = vadd.f32 1.0, %v2436_v8  ;;  %v699_v24 = vadd.f32 %v3307_v51, %v601_v4  ;;  %v603_v13 = vadd.f32 %v602_v7, %v3769_v10 }
 0x13e   :  { %v2440_v33 = vpop.eup %2439  ;;  %2465 = vpow2.f32 %v2118_v53  ;;  %v2119_v55 = vmul.f32 -1.442695, %v696_v41  ;;  %v606_v9 = vpop.f32.mrf.mxu1 }
 0x13f   :  { %v3448_v44 = vpop.eup %2441  ;;  %2467 = vrcp.f32 %v854_v49  ;;  %v855_v35 = vadd.f32 1.0, %v2440_v33  ;;  %v2120_v15 = vmul.f32 -1.442695, %v699_v24  ;;  %v700_v0 = vadd.f32 %v3321_v59, %v603_v13 }
 0x140   :  { %v2444_v40 = vpop.eup %2443  ;;  %2469 = vpow2.f32 %v2119_v55  ;;  %v607_v27 = vadd.f32 %v606_v9, %v3770_v11  ;;  %v608_v17 = vpop.f32.mrf.mxu1  ;;  %v3773_v55 = vld [vmem:[#allocation17_spill] sm:$0xff] }
 0x141   :  { %v3452_v63 = vpop.eup %2445  ;;  %2471 = vrcp.f32 %v855_v35  ;;  %v856_v57 = vadd.f32 1.0, %v2444_v40  ;;  %v2121_v19 = vmul.f32 -1.442695, %v700_v0  ;;  %v609_v39 = vadd.f32 %v608_v17, %v3771_v52 }
 0x142   :  { %v2448_v20 = vpop.eup %2447  ;;  %2473 = vpow2.f32 %v2120_v15  ;;  %v703_v23 = vadd.f32 %v3307_v51, %v607_v27  ;;  %v612_v29 = vpop.f32.mrf.mxu1 }
 0x143   :  { %v2450_v34 = vpop.eup %2449  ;;  %2475 = vrcp.f32 %v856_v57  ;;  %v704_v53 = vadd.f32 %v3321_v59, %v609_v39  ;;  %v613_v4 = vadd.f32 %v612_v29, %v3772_v31  ;;  %v939_v40 = vmul.f32 %v2448_v20, %v3327_v18  ;;  %v3774_v57 = vld [vmem:[#allocation18_spill] sm:$0xff] }
 0x144   :  { %v2452_v8 = vpop.eup %2451  ;;  %v857_v41 = vadd.f32 1.0, %v2450_v34  ;;  %2477 = vpow2.f32 %v2121_v19  ;;  %v2122_v7 = vmul.f32 -1.442695, %v703_v23  ;;  %v614_v49 = vpop.f32.mrf.mxu1 }
 0x145   :  { %v2454_v24 = vpop.eup %2453  ;;  %v858_v10 = vadd.f32 1.0, %v2452_v8  ;;  %v2123_v13 = vmul.f32 -1.442695, %v704_v53  ;;  %v707_v33 = vadd.f32 %v3307_v51, %v613_v4  ;;  %v615_v9 = vadd.f32 %v614_v49, %v3773_v55 }
 0x146   :  { %v2456_v35 = vpop.eup %2455  ;;  %2479 = vrcp.f32 %v857_v41  ;;  %v618_v15 = vpop.f32.mrf.mxu1  ;;  %v940_v0 = vmul.f32 %v2454_v24, %v3333_v12  ;;  %v3775_v24 = vld [vmem:[#allocation21_spill] sm:$0xff] }
 0x147   :  { %v2458_v11 = vpop.eup %2457  ;;  %2481 = vrcp.f32 %v858_v10  ;;  %v2124_v27 = vmul.f32 -1.442695, %v707_v33  ;;  %v708_v17 = vadd.f32 %v3321_v59, %v615_v9  ;;  %v619_v19 = vadd.f32 %v618_v15, %v3774_v57 }
 0x148   :  { %v2460_v52 = vpop.eup %2459  ;;  %v859_v39 = vadd.f32 1.0, %v2458_v11  ;;  %2483 = vpow2.f32 %v2122_v7  ;;  %1352 = vmatprep.mubr.f32.mxu1 %v940_v0  ;;  %v620_v23 = vpop.f32.mrf.mxu1  ;;  %v941_v8 = vmul.f32 %v2456_v35, %v3340_v48 }
 0x149   :  { %v2462_v29 = vpop.eup %2461  ;;  %2485 = vpow2.f32 %v2123_v13  ;;  %v2125_v34 = vmul.f32 -1.442695, %v708_v17  ;;  %v711_v53 = vadd.f32 %v3307_v51, %v619_v19  ;;  %v621_v12 = vadd.f32 %v620_v23, %v3207_v16  ;;  %1353 = vmatmul.mubr.f32.vlgmr.msra.gmra.mxu1 %v939_v40 }
 0x14a   :  { %v2464_v18 = vpop.eup %2463  ;;  %2487 = vrcp.f32 %v859_v39  ;;  %v860_v20 = vadd.f32 1.0, %v2462_v29  ;;  %v624_v31 = vpop.f32.mrf.mxu1  ;;  %v942_v4 = vmul.f32 %v2460_v52, %v3347_v30 }
 0x14b   :  { %v2466_v41 = vpop.eup %2465  ;;  %2489 = vpow2.f32 %v2124_v27  ;;  %v2126_v7 = vmul.f32 -1.442695, %v711_v53  ;;  %v712_v49 = vadd.f32 %v3321_v59, %v621_v12  ;;  %v625_v10 = vadd.f32 %v624_v31, %v3775_v24  ;;  %v507_v39 = vpop.f32.mrf.mxu0 }
 0x14c   :  { %v2468_v13 = vpop.eup %2467  ;;  %2491 = vrcp.f32 %v860_v20  ;;  %v861_v33 = vadd.f32 1.0, %v2466_v41  ;;  %1358 = vmatprep.mubr.f32.mxu1 %v942_v4  ;;  %v626_v16 = vpop.f32.mrf.mxu1  ;;  %v943_v11 = vmul.f32 %v2464_v18, %v3351_v32 }
 0x14d   :  { %v2470_v55 = vpop.eup %2469  ;;  %2493 = vpow2.f32 %v2125_v34  ;;  %v2127_v9 = vmul.f32 -1.442695, %v712_v49  ;;  %v715_v15 = vadd.f32 %v3307_v51, %v625_v10  ;;  %v627_v30 = vadd.f32 %v626_v16, %v3231_v61  ;;  %1359 = vmatmul.mubr.f32.gmra.mxu1 %v941_v8 }
 0x14e   :  { %v2472_v48 = vpop.eup %2471  ;;  %2495 = vrcp.f32 %v861_v33  ;;  %v862_v35 = vadd.f32 1.0, %v2470_v55  ;;  %v630_v0 = vpop.f32.mrf.mxu1  ;;  %v944_v40 = vmul.f32 %v2468_v13, %v3355_v2 }
 0x14f   :  { %v2474_v27 = vpop.eup %2473  ;;  %2497 = vpow2.f32 %v2126_v7  ;;  %v2128_v17 = vmul.f32 -1.442695, %v715_v15  ;;  %v716_v57 = vadd.f32 %v3321_v59, %v627_v30  ;;  %v631_v19 = vadd.f32 %v630_v0, %v3242_v47  ;;  %v509_v7 = vpop.f32.mrf.mxu0 }
 0x150   :  { %v2476_v52 = vpop.eup %2475  ;;  %2499 = vrcp.f32 %v862_v35  ;;  %v863_v61 = vadd.f32 1.0, %v2474_v27  ;;  %1364 = vmatprep.mubr.f32.mxu1 %v944_v40  ;;  %v632_v23 = vpop.f32.mrf.mxu1  ;;  %v945_v47 = vmul.f32 %v2472_v48, %v3362_v56 }
 0x151   :  { %v2478_v29 = vpop.eup %2477  ;;  %2501 = vpow2.f32 %v2127_v9  ;;  %v2129_v34 = vmul.f32 -1.442695, %v716_v57  ;;  %v719_v2 = vadd.f32 %v3307_v51, %v631_v19  ;;  %v633_v32 = vadd.f32 %v632_v23, %v3252_v36  ;;  %1365 = vmatmul.mubr.f32.gmra.mxu1 %v943_v11  ;;  %v513_v35 = vpop.f32.mrf.mxu0 }
 0x152   :  { %2503 = vrcp.f32 %v863_v61  ;;  %v864_v53 = vadd.f32 1.0, %v2478_v29  ;;  %v636_v12 = vpop.f32.mrf.mxu1  ;;  %v946_v18 = vmul.f32 %v2476_v52, %v3369_v14 }
 0x153   :  { %v2480_v20 = vpop.eup %2479  ;;  %2505 = vpow2.f32 %v2128_v17  ;;  %v2130_v31 = vmul.f32 -1.442695, %v719_v2  ;;  %v720_v4 = vadd.f32 %v3321_v59, %v633_v32  ;;  %v637_v8 = vadd.f32 %v636_v12, %v3265_v42  ;;  %v3776_v17 = vld [vmem:[#allocation2_spill] sm:$0xff]  ;;  %v3777_v2 = vld [vmem:[#allocation3_spill] sm:$0xff] }
 0x154   :  { %v2482_v41 = vpop.eup %2481  ;;  %2507 = vrcp.f32 %v864_v53  ;;  %1370 = vmatprep.mubr.f32.mxu1 %v946_v18  ;;  %v638_v36 = vpop.f32.mrf.mxu1  ;;  %v947_v42 = vmul.f32 %v2480_v20, %v3373_v38  ;;  %v508_v57 = vadd.f32 %v507_v39, %v3776_v17  ;;  %v510_v32 = vadd.f32 %v509_v7, %v3777_v2  ;;  %v3778_v7 = vld [vmem:[#allocation4_spill] sm:$0xff] }
 0x155   :  { %v2484_v49 = vpop.eup %2483  ;;  %2509 = vpow2.f32 %v2129_v34  ;;  %v2131_v24 = vmul.f32 -1.442695, %v720_v4  ;;  %v723_v10 = vadd.f32 %v3307_v51, %v637_v8  ;;  %v639_v14 = vadd.f32 %v638_v36, %v3276_v1  ;;  %1371 = vmatmul.mubr.f32.gmra.mxu1 %v945_v47 }
 0x156   :  { %v2486_v56 = vpop.eup %2485  ;;  %v865_v13 = vadd.f32 1.0, %v2484_v49  ;;  %2511 = vpow2.f32 %v2130_v31  ;;  %v642_v33 = vpop.f32.mrf.mxu1  ;;  %v948_v16 = vmul.f32 %v2482_v41, %v3377_v62  ;;  %v717_v18 = vadd.f32 %v3220_v45, %v508_v57 }
 0x157   :  { %v2488_v55 = vpop.eup %2487  ;;  %v866_v9 = vadd.f32 1.0, %v2486_v56  ;;  %2513 = vpow2.f32 %v2131_v24  ;;  %v2132_v15 = vmul.f32 -1.442695, %v723_v10  ;;  %v724_v30 = vadd.f32 %v3321_v59, %v639_v14  ;;  %v3779_v14 = vld [vmem:[#allocation5_spill] sm:$0xff] }
 0x158   :  { %v2490_v48 = vpop.eup %2489  ;;  %2515 = vrcp.f32 %v865_v13  ;;  %v643_v1 = vadd.f32 %v642_v33, %v3288_v50  ;;  %1376 = vmatprep.mubr.f32.mxu1 %v948_v16  ;;  %v644_v0 = vpop.f32.mrf.mxu1  ;;  %v949_v29 = vmul.f32 %v2488_v55, %v3384_v22  ;;  %v718_v4 = vadd.f32 %v3228_v58, %v510_v32 }
 0x159   :  { %v2492_v40 = vpop.eup %2491  ;;  %2517 = vrcp.f32 %v866_v9  ;;  %v867_v11 = vadd.f32 1.0, %v2490_v48  ;;  %v2133_v27 = vmul.f32 -1.442695, %v724_v30  ;;  %v645_v62 = vadd.f32 %v644_v0, %v3299_v21  ;;  %1377 = vmatmul.mubr.f32.gmra.mxu1 %v947_v42  ;;  %v515_v21 = vpop.f32.mrf.mxu0  ;;  %v3781_v0 = vld [vmem:[#allocation7_spill] sm:$0xff] }
 0x15a   :  { %v2494_v38 = vpop.eup %2493  ;;  %2519 = vpow2.f32 %v2132_v15  ;;  %v727_v19 = vadd.f32 %v3307_v51, %v643_v1  ;;  %v950_v52 = vmul.f32 %v2492_v40, %v3391_v46  ;;  %v514_v36 = vadd.f32 %v513_v35, %v3778_v7  ;;  %v3780_v15 = vld [vmem:[#allocation6_spill] sm:$0xff]  ;;  %v2363_v7 = vld [vmem:[%s3732_s8 + $0x94] ss:$8 sps:$4 sm:$0xff]  }
 0x15b   :  { %v2496_v61 = vpop.eup %2495  ;;  %2521 = vrcp.f32 %v867_v11  ;;  %v868_v50 = vadd.f32 1.0, %v2494_v38  ;;  %v728_v23 = vadd.f32 %v3321_v59, %v645_v62  ;;  %v519_v8 = vpop.f32.mrf.mxu0  ;;  %v516_v56 = vadd.f32 %v515_v21, %v3779_v14  ;;  %1705 = vmatprep.subr.bf16.mxu0 %v2363_v7 }
 0x15c   :  { %v2498_v34 = vpop.eup %2497  ;;  %2523 = vpow2.f32 %v2133_v27  ;;  %v2134_v53 = vmul.f32 -1.442695, %v727_v19  ;;  %1382 = vmatprep.mubr.f32.mxu1 %v950_v52  ;;  %v951_v20 = vmul.f32 %v2496_v61, %v3395_v26  ;;  %v721_v9 = vadd.f32 %v3220_v45, %v514_v36  ;;  %v2361_v36 = vld [vmem:[%s3732_s8 + $0x90] ss:$8 sps:$4 sm:$0xff]  }
 0x15d   :  { %v2500_v39 = vpop.eup %2499  ;;  %2525 = vrcp.f32 %v868_v50  ;;  %v869_v12 = vadd.f32 1.0, %v2498_v34  ;;  %v2135_v51 = vmul.f32 -1.442695, %v728_v23  ;;  %1383 = vmatmul.mubr.f32.gmra.mxu1 %v949_v29  ;;  %v521_v16 = vpop.f32.mrf.mxu0  ;;  %v520_v30 = vadd.f32 %v519_v8, %v3780_v15  ;;  %1706 = vmatpush2.bf16.msra.mxu0 %v2361_v36 }
 0x15e   :  { %v2502_v46 = vpop.eup %2501  ;;  %2527 = vpow2.f32 %v2134_v53  ;;  %v952_v59 = vmul.f32 %v2500_v39, %v3398_v28  ;;  %v522_v40 = vadd.f32 %v521_v16, %v3781_v0 }
 0x15f   :  { %v2504_v47 = vpop.eup %2503  ;;  %2529 = vrcp.f32 %v869_v12  ;;  %v870_v22 = vadd.f32 1.0, %v2502_v46  ;;  %v725_v17 = vadd.f32 %v3220_v45, %v520_v30 }
 0x160   :  { %v2506_v31 = vpop.eup %2505  ;;  %2531 = vpow2.f32 %v2135_v51  ;;  %1388 = vmatprep.mubr.f32.mxu1 %v952_v59  ;;  %v953_v13 = vmul.f32 %v2504_v47, %v3405_v37  ;;  %v722_v37 = vadd.f32 %v3228_v58, %v516_v56  ;;  %v726_v61 = vadd.f32 %v3228_v58, %v522_v40 }
 0x161   :  { %v2508_v41 = vpop.eup %2507  ;;  %2533 = vrcp.f32 %v870_v22  ;;  %v871_v49 = vadd.f32 1.0, %v2506_v31  ;;  %1389 = vmatmul.mubr.f32.gmra.mxu1 %v951_v20 }
 0x162   :  { %v2510_v24 = vpop.eup %2509  ;;  %2535 = vtanh.f32 %v717_v18  ;;  %v954_v28 = vmul.f32 %v2508_v41, %v3411_v54 }
 0x163   :  { %v2512_v10 = vpop.eup %2511  ;;  %2537 = vrcp.f32 %v871_v49  ;;  %v872_v26 = vadd.f32 1.0, %v2510_v24  ;;  %v2366_v49 = vld [vmem:[%s3732_s8 + $0x84] ss:$8 sps:$4 sm:$0xff]   ;;  %v2364_v24 = vld [vmem:[%s3732_s8 + $0x80] ss:$8 sps:$4 sm:$0xff]  }
 0x164   :  { %v2514_v33 = vpop.eup %2513  ;;  %2539 = vtanh.f32 %v718_v4  ;;  %v873_v42 = vadd.f32 1.0, %v2512_v10  ;;  %1394 = vmatprep.mubr.f32.mxu1 %v954_v28  ;;  %1707 = vmatprep.subr.bf16.mxu0 %v2366_v49  ;;  %v1027_v28 = vpop.f32.mrf.mxu0 }
 0x165   :  { %v2516_v55 = vpop.eup %2515  ;;  %2541 = vrcp.f32 %v872_v26  ;;  %v874_v48 = vadd.f32 1.0, %v2514_v33  ;;  %1395 = vmatmul.mubr.f32.gmra.mxu1 %v953_v13  ;;  %1708 = vmatpush2.bf16.msra.mxu0 %v2364_v24 }
 0x166   :  { %v2518_v54 = vpop.eup %2517  ;;  %2543 = vrcp.f32 %v873_v42  ;;  %v955_v35 = vmul.f32 %v2516_v55, %v3415_v5  ;;  %v1029_v10 = vpop.f32.mrf.mxu0 }
 0x167   :  { %v2520_v1 = vpop.eup %2519  ;;  %2545 = vrcp.f32 %v874_v48  ;;  %v956_v11 = vmul.f32 %v2518_v54, %v3421_v6  ;;  %v971_v54 = vld [vmem:[%s3734_s2] sm:$0x3] }
 0x168   :  { %v2522_v27 = vpop.eup %2521  ;;  %v875_v62 = vadd.f32 1.0, %v2520_v1  ;;  %2547 = vtanh.f32 %v721_v9  ;;  %v1033_v14 = vpop.f32.mrf.mxu0 }
 0x169   :  { %v2524_v38 = vpop.eup %2523  ;;  %1400 = vmatprep.mubr.f32.mxu1 %v956_v11  ;;  %v957_v57 = vmul.f32 %v2522_v27, %v3429_v60  ;;  %v3783_v11 = vld [vmem:[#allocation20_spill] sm:$0xff] }
 0x16a   :  { %v2526_v19 = vpop.eup %2525  ;;  %2549 = vrcp.f32 %v875_v62  ;;  %v876_v5 = vadd.f32 1.0, %v2524_v38  ;;  %1401 = vmatmul.mubr.f32.gmra.mxu1 %v955_v35  ;;  %v1035_v56 = vpop.f32.mrf.mxu0  ;;  %v1148_v35 = vld [vmem:[%s3735_s7] sm:$0x3]  ;;  %v3552_v27 = vrot.slane %v971_v54, %v3783_v11 }
 0x16b   :  { %v2528_v52 = vpop.eup %2527  ;;  %2551 = vtanh.f32 %v722_v37  ;;  %v958_v50 = vmul.f32 %v2526_v19, %v3436_v3  ;;  %v3782_v37 = vld [vmem:[#allocation19_spill] sm:$0xff]  ;;  %v3555_v62 = vrot.slane %v1148_v35, %v3783_v11 }
 0x16c   :  { %v2530_v6 = vpop.eup %2529  ;;  %2553 = vrcp.f32 %v876_v5  ;;  %v877_v23 = vadd.f32 1.0, %v2528_v52  ;;  %v1039_v26 = vpop.f32.mrf.mxu0  ;;  %v3546_v0 = vrot.slane %v971_v54, %v3782_v37  ;;  %v3549_v40 = vrot.slane %v1148_v35, %v3782_v37 }
 0x16d   :  { %v2532_v29 = vpop.eup %2531  ;;  %2555 = vtanh.f32 %v725_v17  ;;  %1406 = vmatprep.mubr.f32.mxu1 %v958_v50  ;;  %v959_v45 = vmul.f32 %v2530_v6, %v3440_v25  ;;  %v1030_v52 = vadd.f32 %v1029_v10, %v3552_v27 }
 0x16e   :  { %v2534_v34 = vpop.eup %2533  ;;  %2557 = vrcp.f32 %v877_v23  ;;  %v878_v60 = vadd.f32 1.0, %v2532_v29  ;;  %1407 = vmatmul.mubr.f32.gmra.mxu1 %v957_v57  ;;  %v1041_v13 = vpop.f32.mrf.mxu0  ;;  %v1028_v57 = vadd.f32 %v1027_v28, %v3546_v0 }
 0x16f   :  { %v2536_v2 = vpop.eup %2535  ;;  %2559 = vtanh.f32 %v726_v61  ;;  %v960_v32 = vmul.f32 %v2534_v34, %v3444_v43 }
 0x170   :  { %v2538_v21 = vpop.eup %2537  ;;  %2561 = vrcp.f32 %v878_v60  ;;  %v1045_v33 = vpop.f32.mrf.mxu0 }
 0x171   :  { %v2540_v58 = vpop.eup %2539  ;;  %1412 = vmatprep.mubr.f32.mxu1 %v960_v32  ;;  %v961_v3 = vmul.f32 %v2538_v21, %v3448_v44 }
 0x172   :  { %v2542_v53 = vpop.eup %2541  ;;  %1413 = vmatmul.mubr.f32.gmra.mxu1 %v959_v45  ;;  %v1047_v16 = vpop.f32.mrf.mxu0  ;;  %v1034_v45 = vadd.f32 %v1033_v14, %v3546_v0 }
 0x173   :  { %v2544_v39 = vpop.eup %2543  ;;  %v962_v12 = vmul.f32 %v2542_v53, %v3452_v63 }
 0x174   :  { %v2546_v25 = vpop.eup %2545  ;;  %v963_v51 = vmul.f32 %v2544_v39, %v2536_v2  ;;  %v1051_v42 = vpop.f32.mrf.mxu0  ;;  %v1036_v2 = vadd.f32 %v1035_v56, %v3552_v27  ;;  %v1040_v39 = vadd.f32 %v1039_v26, %v3546_v0 }
 0x175   :  { %1418 = vmatprep.mubr.f32.mxu1 %v962_v12  ;;  %v964_v46 = vmul.f32 %v2546_v25, %v2540_v58  ;;  %v2548_v18 = vpop.eup %2547  ;;  %v1052_v36 = vadd.f32 %v1051_v42, %v3546_v0 }
 0x176   :  { %1419 = vmatmul.mubr.f32.gmra.mxu1 %v961_v3  ;;  %v1053_v55 = vpop.f32.mrf.mxu0 }
 0x177   :  { %v2550_v59 = vpop.eup %2549  ;;  %1424 = vmatprep.mubr.f32.mxu1 %v964_v46  ;;  %v1054_v28 = vadd.f32 %v1053_v55, %v3552_v27 }
 0x178   :  { %v2552_v43 = vpop.eup %2551  ;;  %v965_v47 = vmul.f32 %v2550_v59, %v2548_v18  ;;  %v3529_v9 = vpop.f32.mrf.mxu0 }
 0x179   :  { %v2554_v22 = vpop.eup %2553 }
 0x17a   :  { %v2556_v20 = vpop.eup %2555  ;;  %1425 = vmatmul.mubr.f32.gmra.mxu1 %v963_v51  ;;  %v966_v31 = vmul.f32 %v2554_v22, %v2552_v43  ;;  %v3531_v15 = vpop.f32.mrf.mxu0  ;;  %v1042_v51 = vadd.f32 %v1041_v13, %v3552_v27  ;;  %v1046_v22 = vadd.f32 %v1045_v33, %v3546_v0  ;;  %v1058_v33 = vadd.f32 %v3529_v9, %v3546_v0 }
 0x17b   :  { %v2558_v44 = vpop.eup %2557  ;;  %v1060_v42 = vadd.f32 %v3531_v15, %v3552_v27 }
 0x17c   :  { %v2560_v4 = vpop.eup %2559  ;;  %1430 = vmatprep.mubr.f32.mxu1 %v966_v31  ;;  %v967_v8 = vmul.f32 %v2558_v44, %v2556_v20  ;;  %v3533_v30 = vpop.f32.mrf.mxu0  ;;  %v1048_v44 = vadd.f32 %v1047_v16, %v3552_v27 }
 0x17d   :  { %v2562_v41 = vpop.eup %2561 }
 0x17e   :  { %1431 = vmatmul.mubr.f32.gmra.mxu1 %v965_v47  ;;  %v968_v63 = vmul.f32 %v2562_v41, %v2560_v4  ;;  %v3535_v48 = vpop.f32.mrf.mxu0 }
 0x180   :  { %1436 = vmatprep.mubr.f32.mxu1 %v968_v63  ;;  %v3543_v1 = vpop.f32.mrf.mxu0 }
 0x182   :  { %1437 = vmatmul.mubr.f32.gmra.mxu1 %v967_v8  ;;  %v3557_v17 = vpop.f32.mrf.mxu0 }
 0x184   :  { %v3563_v23 = vpop.f32.mrf.mxu0 }
 0x186   :  { %v3569_v3 = vpop.f32.mrf.mxu0 }
 0x188   :  { %v3575_v43 = vpop.f32.mrf.mxu0 }
 0x18a   :  { %v1083_v63 = vpop.f32.mrf.mxu0 }
 0x18c   :  { %v1087_v26 = vpop.f32.mrf.mxu0 }
 0x209   :  { %v1354_v38 = vpop.f32.mrf.mxu1 }
 0x20a   :  { %v1355_v19 = vadd.f32 %v1354_v38, %v3549_v40 }
 0x20b   :  { %v1356_v5 = vpop.f32.mrf.mxu1 }
 0x20c   :  { %v1357_v61 = vadd.f32 %v1356_v5, %v3555_v62  ;;  %v1443_v29 = vadd.f32 %v1355_v19, %v1028_v57  ;;  %v1089_v57 = vpop.f32.mrf.mxu0  ;;  %v1064_v5 = vadd.f32 %v3533_v30, %v3546_v0 }
 0x20d   :  { %v1360_v50 = vpop.f32.mrf.mxu1 }
 0x20e   :  { %v1444_v6 = vadd.f32 %v1357_v61, %v1030_v52  ;;  %v1361_v34 = vadd.f32 %v1360_v50, %v3549_v40  ;;  %v1066_v61 = vadd.f32 %v3535_v48, %v3552_v27 }
 0x20f   :  { %v1362_v60 = vpop.f32.mrf.mxu1 }
 0x210   :  { %v1363_v32 = vadd.f32 %v1362_v60, %v3555_v62  ;;  %1709 = vmatprep.mubr.f32.mxu0 %v1444_v6  ;;  %v1445_v53 = vadd.f32 %v1361_v34, %v1034_v45  ;;  %v1070_v34 = vadd.f32 %v3543_v1, %v3546_v0 }
 0x211   :  { %v1366_v21 = vpop.f32.mrf.mxu1  ;;  %1710 = vmatmul.mubr.f32.vlgmr.msra.gmra.mxu0 %v1443_v29  ;;  %v1093_v29 = vpop.f32.mrf.mxu0 }
 0x212   :  { %v1446_v58 = vadd.f32 %v1363_v32, %v1036_v2  ;;  %v1367_v12 = vadd.f32 %v1366_v21, %v3549_v40  ;;  %v1072_v2 = vadd.f32 %v3557_v17, %v3552_v27 }
 0x213   :  { %v1368_v25 = vpop.f32.mrf.mxu1 }
 0x214   :  { %v1369_v46 = vadd.f32 %v1368_v25, %v3555_v62  ;;  %1715 = vmatprep.mubr.f32.mxu0 %v1446_v58  ;;  %v1447_v47 = vadd.f32 %v1367_v12, %v1040_v39  ;;  %v1095_v58 = vpop.f32.mrf.mxu0  ;;  %v1076_v39 = vadd.f32 %v3563_v23, %v3546_v0  ;;  %v1078_v25 = vadd.f32 %v3569_v3, %v3552_v27 }
 0x215   :  { %v1372_v18 = vpop.f32.mrf.mxu1  ;;  %1716 = vmatmul.mubr.f32.gmra.mxu0 %v1445_v53 }
 0x216   :  { %v1448_v59 = vadd.f32 %v1369_v46, %v1042_v51  ;;  %v1373_v20 = vadd.f32 %v1372_v18, %v3549_v40  ;;  %v1099_v46 = vpop.f32.mrf.mxu0 }
 0x217   :  { %v1374_v31 = vpop.f32.mrf.mxu1 }
 0x218   :  { %v1375_v4 = vadd.f32 %v1374_v31, %v3555_v62  ;;  %1721 = vmatprep.mubr.f32.mxu0 %v1448_v59  ;;  %v1449_v7 = vadd.f32 %v1373_v20, %v1046_v22  ;;  %v1084_v20 = vadd.f32 %v1083_v63, %v3552_v27  ;;  %v1101_v3 = vpop.f32.mrf.mxu0 }
 0x219   :  { %v1378_v8 = vpop.f32.mrf.mxu1  ;;  %1722 = vmatmul.mubr.f32.gmra.mxu0 %v1447_v47  ;;  %v1082_v47 = vadd.f32 %v3575_v43, %v3546_v0  ;;  %v1090_v43 = vadd.f32 %v1089_v57, %v3552_v27 }
 0x21a   :  { %v1450_v41 = vadd.f32 %v1375_v4, %v1048_v44  ;;  %v1379_v49 = vadd.f32 %v1378_v8, %v3549_v40  ;;  %v1105_v63 = vpop.f32.mrf.mxu0 }
 0x21b   :  { %v1380_v24 = vpop.f32.mrf.mxu1 }
 0x21c   :  { %v1381_v10 = vadd.f32 %v1380_v24, %v3555_v62  ;;  %1727 = vmatprep.mubr.f32.mxu0 %v1450_v41  ;;  %v1451_v13 = vadd.f32 %v1379_v49, %v1052_v36  ;;  %v1088_v41 = vadd.f32 %v1087_v26, %v3546_v0  ;;  %v1096_v26 = vadd.f32 %v1095_v58, %v3552_v27 }
 0x21d   :  { %v1384_v14 = vpop.f32.mrf.mxu1  ;;  %1728 = vmatmul.mubr.f32.gmra.mxu0 %v1449_v7 }
 0x21e   :  { %v1452_v56 = vadd.f32 %v1381_v10, %v1054_v28  ;;  %v1385_v16 = vadd.f32 %v1384_v14, %v3549_v40  ;;  %v1094_v14 = vadd.f32 %v1093_v29, %v3546_v0 }
 0x21f   :  { %v1386_v54 = vpop.f32.mrf.mxu1 }
 0x220   :  { %v1387_v35 = vadd.f32 %v1386_v54, %v3555_v62  ;;  %1733 = vmatprep.mubr.f32.mxu0 %v1452_v56  ;;  %v1453_v19 = vadd.f32 %v1385_v16, %v1058_v33  ;;  %v1107_v54 = vpop.f32.mrf.mxu0 }
 0x221   :  { %v1390_v55 = vpop.f32.mrf.mxu1  ;;  %1734 = vmatmul.mubr.f32.gmra.mxu0 %v1451_v13 }
 0x222   :  { %v1454_v38 = vadd.f32 %v1387_v35, %v1060_v42  ;;  %v1391_v52 = vadd.f32 %v1390_v55, %v3549_v40  ;;  %v1100_v55 = vadd.f32 %v1099_v46, %v3546_v0  ;;  %v2374_v46 = vld [vmem:[%s3736_s10 + $0x20] sm:$0xff]  }
 0x223   :  { %v1392_v9 = vpop.f32.mrf.mxu1 }
 0x224   :  { %v1393_v50 = vadd.f32 %v1392_v9, %v3555_v62  ;;  %1739 = vmatprep.mubr.f32.mxu0 %v1454_v38  ;;  %v1455_v45 = vadd.f32 %v1391_v52, %v1064_v5  ;;  %v1111_v9 = vpop.f32.mrf.mxu0 }
 0x225   :  { %v1396_v15 = vpop.f32.mrf.mxu1  ;;  %1740 = vmatmul.mubr.f32.gmra.mxu0 %v1453_v19  ;;  %v1102_v19 = vadd.f32 %v1101_v3, %v3552_v27 }
 0x226   :  { %v1456_v6 = vadd.f32 %v1393_v50, %v1066_v61  ;;  %v1397_v60 = vadd.f32 %v1396_v15, %v3549_v40  ;;  %v1106_v15 = vadd.f32 %v1105_v63, %v3546_v0 }
 0x227   :  { %v1398_v30 = vpop.f32.mrf.mxu1 }
 0x228   :  { %v1399_v32 = vadd.f32 %v1398_v30, %v3555_v62  ;;  %1745 = vmatprep.mubr.f32.mxu0 %v1456_v6  ;;  %v1457_v53 = vadd.f32 %v1397_v60, %v1070_v34  ;;  %v1113_v30 = vpop.f32.mrf.mxu0 }
 0x229   :  { %1746 = vmatmul.mubr.f32.gmra.mxu0 %v1455_v45  ;;  %v1108_v45 = vadd.f32 %v1107_v54, %v3552_v27 }
 0x22a   :  { %v1458_v48 = vadd.f32 %v1399_v32, %v1072_v2  ;;  %v1402_v21 = vpop.f32.mrf.mxu1 }
 0x22b   :  { %v1403_v12 = vadd.f32 %v1402_v21, %v3549_v40 }
 0x22c   :  { %v1404_v1 = vpop.f32.mrf.mxu1  ;;  %1751 = vmatprep.mubr.f32.mxu0 %v1458_v48  ;;  %v1112_v48 = vadd.f32 %v1111_v9, %v3546_v0  ;;  %v2368_v0 = vld [vmem:[%s3736_s10 + $0x38] sm:$0xff]  }
 0x22d   :  { %v1405_v17 = vadd.f32 %v1404_v1, %v3555_v62  ;;  %1752 = vmatmul.mubr.f32.gmra.mxu0 %v1457_v53  ;;  %v1459_v59 = vadd.f32 %v1403_v12, %v1076_v39  ;;  %v1114_v53 = vadd.f32 %v1113_v30, %v3552_v27  ;;  %v2370_v27 = vld [vmem:[%s3736_s10 + $0x30] sm:$0xff]  }
 0x22e   :  { %v1408_v51 = vpop.f32.mrf.mxu1 }
 0x22f   :  { %v1460_v18 = vadd.f32 %v1405_v17, %v1078_v25  ;;  %v1409_v22 = vadd.f32 %v1408_v51, %v3549_v40  ;;  %v2367_v25 = vld [vmem:[%s3736_s10 + $0x78] sm:$0xff]   ;;  %v2372_v17 = vld [vmem:[%s3736_s10 + $0x28] sm:$0xff]   ;;  %v2373_v51 = vld [vmem:[%s3736_s10 + $0x60] sm:$0xff]  }
 0x230   :  { %v1410_v23 = vpop.f32.mrf.mxu1  ;;  %2234 = vmatprep.subr.bf16.mxu1 %v2367_v25 }
 0x231   :  { %v1411_v31 = vadd.f32 %v1410_v23, %v3555_v62  ;;  %1757 = vmatprep.mubr.f32.mxu0 %v1460_v18  ;;  %v1461_v8 = vadd.f32 %v1409_v22, %v1082_v47  ;;  %2235 = vmatpush3.bf16.msra.mxu1 %v2368_v0  ;;  %v2375_v18 = vld [vmem:[%s3736_s10 + $0x58] sm:$0xff]   ;;  %v2377_v47 = vld [vmem:[%s3736_s10 + $0x50] sm:$0xff]   ;;  %v2379_v23 = vld [vmem:[%s3736_s10 + $0x48] sm:$0xff]  }
 0x232   :  { %v1414_v44 = vpop.f32.mrf.mxu1  ;;  %1758 = vmatmul.mubr.f32.gmra.mxu0 %v1459_v59  ;;  %v2376_v59 = vld [vmem:[%s3736_s10 + $0x18] sm:$0xff]   ;;  %v2378_v22 = vld [vmem:[%s3736_s10 + $0x10] sm:$0xff]  }
 0x233   :  { %v1462_v4 = vadd.f32 %v1411_v31, %v1084_v20  ;;  %v1415_v7 = vadd.f32 %v1414_v44, %v3549_v40  ;;  %v2380_v20 = vld [vmem:[%s3736_s10 + $0x8] sm:$0xff]   ;;  %v2381_v31 = vld [vmem:[%s3736_s10 + $0x40] sm:$0xff]  }
 0x234   :  { %v1416_v36 = vpop.f32.mrf.mxu1  ;;  %v2382_v44 = vld [vmem:[%s3736_s10] sm:$0xff]  }
 0x235   :  { %v1417_v49 = vadd.f32 %v1416_v36, %v3555_v62  ;;  %1763 = vmatprep.mubr.f32.mxu0 %v1462_v4  ;;  %v1463_v10 = vadd.f32 %v1415_v7, %v1088_v41 }
 0x236   :  { %v1420_v24 = vpop.f32.mrf.mxu1  ;;  %1764 = vmatmul.mubr.f32.gmra.mxu0 %v1461_v8 }
 0x237   :  { %v1464_v28 = vadd.f32 %v1417_v49, %v1090_v43  ;;  %v1421_v56 = vadd.f32 %v1420_v24, %v3549_v40 }
 0x238   :  { %v1422_v13 = vpop.f32.mrf.mxu1 }
 0x239   :  { %v1423_v33 = vadd.f32 %v1422_v13, %v3555_v62  ;;  %1769 = vmatprep.mubr.f32.mxu0 %v1464_v28  ;;  %v1465_v35 = vadd.f32 %v1421_v56, %v1094_v14  ;;  %v1505_v14 = vld [vmem:[%s3737_s9] sm:$0x3] }
 0x23a   :  { %v1426_v16 = vpop.f32.mrf.mxu1  ;;  %1770 = vmatmul.mubr.f32.gmra.mxu0 %v1463_v10 }
 0x23b   :  { %v1466_v42 = vadd.f32 %v1423_v33, %v1096_v26  ;;  %v1427_v38 = vadd.f32 %v1426_v16, %v3549_v40  ;;  %v3686_v26 = vrot.slane %v1505_v14, %v3782_v37  ;;  %v3689_v33 = vrot.slane %v1505_v14, %v3783_v11 }
 0x23c   :  { %v1428_v57 = vpop.f32.mrf.mxu1 }
 0x23d   :  { %v1429_v5 = vadd.f32 %v1428_v57, %v3555_v62  ;;  %1775 = vmatprep.mubr.f32.mxu0 %v1466_v42  ;;  %v1467_v50 = vadd.f32 %v1427_v38, %v1100_v55 }
 0x23e   :  { %v1432_v52 = vpop.f32.mrf.mxu1  ;;  %1776 = vmatmul.mubr.f32.gmra.mxu0 %v1465_v35 }
 0x23f   :  { %v1468_v61 = vadd.f32 %v1429_v5, %v1102_v19  ;;  %v1433_v6 = vadd.f32 %v1432_v52, %v3549_v40 }
 0x240   :  { %v1434_v29 = vpop.f32.mrf.mxu1 }
 0x241   :  { %v1435_v34 = vadd.f32 %v1434_v29, %v3555_v62  ;;  %1781 = vmatprep.mubr.f32.mxu0 %v1468_v61  ;;  %v1469_v32 = vadd.f32 %v1433_v6, %v1106_v15 }
 0x242   :  { %v1438_v60 = vpop.f32.mrf.mxu1  ;;  %1782 = vmatmul.mubr.f32.gmra.mxu0 %v1467_v50 }
 0x243   :  { %v1470_v2 = vadd.f32 %v1435_v34, %v1108_v45  ;;  %v1439_v21 = vadd.f32 %v1438_v60, %v3549_v40  ;;  %v2369_v40 = vld [vmem:[%s3736_s10 + $0x70] sm:$0xff]  }
 0x244   :  { %v1440_v58 = vpop.f32.mrf.mxu1  ;;  %2236 = vmatprep.subr.bf16.mxu1 %v2369_v40 }
 0x245   :  { %v1441_v39 = vadd.f32 %v1440_v58, %v3555_v62  ;;  %1787 = vmatprep.mubr.f32.mxu0 %v1470_v2  ;;  %v1471_v1 = vadd.f32 %v1439_v21, %v1112_v48  ;;  %2237 = vmatpush3.bf16.msra.mxu1 %v2370_v27  ;;  %v2371_v62 = vld [vmem:[%s3736_s10 + $0x68] sm:$0xff]  }
 0x246   :  { %1788 = vmatmul.mubr.f32.gmra.mxu0 %v1469_v32  ;;  %2238 = vmatprep.subr.bf16.mxu1 %v2371_v62 }
 0x247   :  { %v1472_v12 = vadd.f32 %v1441_v39, %v1114_v53 }
 0x249   :  { %1793 = vmatprep.mubr.f32.mxu0 %v1472_v12  ;;  %2239 = vmatpush3.bf16.msra.mxu1 %v2372_v17 }
 0x24a   :  { %1794 = vmatmul.mubr.f32.gmra.mxu0 %v1471_v1  ;;  %2240 = vmatprep.subr.bf16.mxu1 %v2373_v51 }
 0x24d   :  { %2241 = vmatpush3.bf16.msra.mxu1 %v2374_v46 }
 0x24e   :  { %2242 = vmatprep.subr.bf16.mxu1 %v2375_v18 }
 0x251   :  { %2243 = vmatpush3.bf16.msra.mxu1 %v2376_v59 }
 0x252   :  { %2244 = vmatprep.subr.bf16.mxu1 %v2377_v47 }
 0x255   :  { %2245 = vmatpush3.bf16.msra.mxu1 %v2378_v22 }
 0x256   :  { %2246 = vmatprep.subr.bf16.mxu1 %v2379_v23 }
 0x259   :  { %2247 = vmatpush3.bf16.msra.mxu1 %v2380_v20 }
 0x25a   :  { %2248 = vmatprep.subr.bf16.mxu1 %v2381_v31 }
 0x25d   :  { %2249 = vmatpush3.bf16.msra.mxu1 %v2382_v44 }
 0x2d1   :  { %v1711_v3 = vpop.f32.mrf.mxu0 }
 0x2d2   :  { %v1712_v55 = vadd.f32 %v1711_v3, %v3686_v26 }
 0x2d3   :  { %v1713_v4 = vpop.f32.mrf.mxu0 }
 0x2d4   :  { %v1714_v57 = vadd.f32 %v1713_v4, %v3689_v33  ;;  %v1800_v61 = vmax.f32 %v1712_v55, 0.0 }
 0x2d5   :  { %v1717_v8 = vpop.f32.mrf.mxu0 }
 0x2d6   :  { %v1718_v54 = vadd.f32 %v1717_v8, %v3686_v26  ;;  %v1801_v29 = vmax.f32 %v1714_v57, 0.0 }
 0x2d7   :  { %v1719_v41 = vpop.f32.mrf.mxu0 }
 0x2d8   :  { %v1720_v42 = vadd.f32 %v1719_v41, %v3689_v33  ;;  %v1802_v5 = vmax.f32 %v1718_v54, 0.0 }
 0x2d9   :  { %v1723_v7 = vpop.f32.mrf.mxu0 }
 0x2da   :  { %v1724_v38 = vadd.f32 %v1723_v7, %v3686_v26  ;;  %v1803_v11 = vmax.f32 %v1720_v42, 0.0  ;;  %v1830_v60 = vadd.f32 %v1802_v5, %v1800_v61 }
 0x2db   :  { %v1725_v36 = vpop.f32.mrf.mxu0 }
 0x2dc   :  { %v1726_v19 = vadd.f32 %v1725_v36, %v3689_v33  ;;  %v1804_v50 = vmax.f32 %v1724_v38, 0.0  ;;  %v1831_v48 = vadd.f32 %v1803_v11, %v1801_v29 }
 0x2dd   :  { %v1729_v43 = vpop.f32.mrf.mxu0 }
 0x2de   :  { %v1730_v37 = vadd.f32 %v1729_v43, %v3686_v26  ;;  %v1805_v45 = vmax.f32 %v1726_v19, 0.0  ;;  %v1832_v53 = vadd.f32 %v1830_v60, %v1804_v50 }
 0x2df   :  { %v1731_v49 = vpop.f32.mrf.mxu0 }
 0x2e0   :  { %v1732_v9 = vadd.f32 %v1731_v49, %v3689_v33  ;;  %v1806_v30 = vmax.f32 %v1730_v37, 0.0  ;;  %v1833_v25 = vadd.f32 %v1831_v48, %v1805_v45 }
 0x2e1   :  { %v1735_v24 = vpop.f32.mrf.mxu0 }
 0x2e2   :  { %v1736_v15 = vadd.f32 %v1735_v24, %v3686_v26  ;;  %v1807_v21 = vmax.f32 %v1732_v9, 0.0  ;;  %v1834_v27 = vadd.f32 %v1832_v53, %v1806_v30 }
 0x2e3   :  { %v1737_v63 = vpop.f32.mrf.mxu0 }
 0x2e4   :  { %v1738_v34 = vadd.f32 %v1737_v63, %v3689_v33  ;;  %v1808_v39 = vmax.f32 %v1736_v15, 0.0  ;;  %v1835_v46 = vadd.f32 %v1833_v25, %v1807_v21 }
 0x2e5   :  { %v1741_v28 = vpop.f32.mrf.mxu0 }
 0x2e6   :  { %v1742_v2 = vadd.f32 %v1741_v28, %v3686_v26  ;;  %v1809_v0 = vmax.f32 %v1738_v34, 0.0  ;;  %v1836_v47 = vadd.f32 %v1834_v27, %v1808_v39 }
 0x2e7   :  { %v1743_v10 = vpop.f32.mrf.mxu0 }
 0x2e8   :  { %v1744_v58 = vadd.f32 %v1743_v10, %v3689_v33  ;;  %v1810_v62 = vmax.f32 %v1742_v2, 0.0  ;;  %v1837_v31 = vadd.f32 %v1835_v46, %v1809_v0 }
 0x2e9   :  { %v1747_v56 = vpop.f32.mrf.mxu0 }
 0x2ea   :  { %v1748_v12 = vadd.f32 %v1747_v56, %v3686_v26  ;;  %v1811_v18 = vmax.f32 %v1744_v58, 0.0  ;;  %v1838_v4 = vadd.f32 %v1836_v47, %v1810_v62 }
 0x2eb   :  { %v1749_v13 = vpop.f32.mrf.mxu0 }
 0x2ec   :  { %v1750_v40 = vadd.f32 %v1749_v13, %v3689_v33  ;;  %v1812_v22 = vmax.f32 %v1748_v12, 0.0  ;;  %v1839_v36 = vadd.f32 %v1837_v31, %v1811_v18 }
 0x2ed   :  { %v1753_v16 = vpop.f32.mrf.mxu0 }
 0x2ee   :  { %v1754_v17 = vadd.f32 %v1753_v16, %v3686_v26  ;;  %v1813_v44 = vmax.f32 %v1750_v40, 0.0  ;;  %v1840_v24 = vadd.f32 %v1838_v4, %v1812_v22 }
 0x2ef   :  { %v1755_v35 = vpop.f32.mrf.mxu0 }
 0x2f0   :  { %v1756_v59 = vadd.f32 %v1755_v35, %v3689_v33  ;;  %v1814_v8 = vmax.f32 %v1754_v17, 0.0  ;;  %v1841_v14 = vadd.f32 %v1839_v36, %v1813_v44 }
 0x2f2   :  { %v1759_v52 = vpop.f32.mrf.mxu0  ;;  %v1815_v43 = vmax.f32 %v1756_v59, 0.0  ;;  %v1842_v16 = vadd.f32 %v1840_v24, %v1814_v8 }
 0x2f3   :  { %v1760_v23 = vadd.f32 %v1759_v52, %v3686_v26 }
 0x2f4   :  { %v1761_v6 = vpop.f32.mrf.mxu0  ;;  %v1843_v55 = vadd.f32 %v1841_v14, %v1815_v43 }
 0x2f5   :  { %v1762_v3 = vadd.f32 %v1761_v6, %v3689_v33  ;;  %v1816_v63 = vmax.f32 %v1760_v23, 0.0 }
 0x2f6   :  { %v1765_v32 = vpop.f32.mrf.mxu0 }
 0x2f7   :  { %v1766_v41 = vadd.f32 %v1765_v32, %v3686_v26  ;;  %v1817_v56 = vmax.f32 %v1762_v3, 0.0  ;;  %v1844_v19 = vadd.f32 %v1842_v16, %v1816_v63 }
 0x2f8   :  { %v1767_v1 = vpop.f32.mrf.mxu0 }
 0x2f9   :  { %v1768_v49 = vadd.f32 %v1767_v1, %v3689_v33  ;;  %v1818_v54 = vmax.f32 %v1766_v41, 0.0  ;;  %v1845_v11 = vadd.f32 %v1843_v55, %v1817_v56 }
 0x2fa   :  { %v1771_v51 = vpop.f32.mrf.mxu0 }
 0x2fb   :  { %v1772_v28 = vadd.f32 %v1771_v51, %v3686_v26  ;;  %v1819_v38 = vmax.f32 %v1768_v49, 0.0  ;;  %v1846_v50 = vadd.f32 %v1844_v19, %v1818_v54 }
 0x2fc   :  { %v1773_v20 = vpop.f32.mrf.mxu0 }
 0x2fd   :  { %v1774_v13 = vadd.f32 %v1773_v20, %v3689_v33  ;;  %v1820_v5 = vmax.f32 %v1772_v28, 0.0  ;;  %v1847_v29 = vadd.f32 %v1845_v11, %v1819_v38 }
 0x2fe   :  { %v1777_v7 = vpop.f32.mrf.mxu0 }
 0x2ff   :  { %v1778_v42 = vadd.f32 %v1777_v7, %v3686_v26  ;;  %v1821_v9 = vmax.f32 %v1774_v13, 0.0  ;;  %v1848_v60 = vadd.f32 %v1846_v50, %v1820_v5 }
 0x300   :  { %v1779_v10 = vpop.f32.mrf.mxu0 }
 0x301   :  { %v1780_v57 = vadd.f32 %v1779_v10, %v3689_v33  ;;  %v1822_v15 = vmax.f32 %v1778_v42, 0.0  ;;  %v1849_v32 = vadd.f32 %v1847_v29, %v1821_v9 }
 0x302   :  { %v1783_v35 = vpop.f32.mrf.mxu0 }
 0x303   :  { %v1784_v37 = vadd.f32 %v1783_v35, %v3686_v26  ;;  %v1823_v45 = vmax.f32 %v1780_v57, 0.0  ;;  %v1850_v58 = vadd.f32 %v1848_v60, %v1822_v15 }
 0x304   :  { %v1785_v52 = vpop.f32.mrf.mxu0 }
 0x305   :  { %v1786_v61 = vadd.f32 %v1785_v52, %v3689_v33  ;;  %v1824_v30 = vmax.f32 %v1784_v37, 0.0  ;;  %v1851_v12 = vadd.f32 %v1849_v32, %v1823_v45 }
 0x306   :  { %v1789_v6 = vpop.f32.mrf.mxu0 }
 0x307   :  { %v1790_v34 = vadd.f32 %v1789_v6, %v3686_v26  ;;  %v1825_v48 = vmax.f32 %v1786_v61, 0.0  ;;  %v1852_v0 = vadd.f32 %v1850_v58, %v1824_v30 }
 0x308   :  { %v1791_v2 = vpop.f32.mrf.mxu0 }
 0x309   :  { %v1792_v21 = vadd.f32 %v1791_v2, %v3689_v33  ;;  %v1826_v53 = vmax.f32 %v1790_v34, 0.0  ;;  %v1853_v27 = vadd.f32 %v1851_v12, %v1825_v48 }
 0x30a   :  { %v1795_v39 = vpop.f32.mrf.mxu0 }
 0x30b   :  { %v1827_v1 = vmax.f32 %v1792_v21, 0.0  ;;  %v1796_v25 = vadd.f32 %v1795_v39, %v3686_v26  ;;  %v1854_v51 = vadd.f32 %v1852_v0, %v1826_v53  ;;  %v2217_v26 = vld [vmem:[%s3738_s11] ss:$0 sm:$0xff] }
 0x30c   :  { %v1797_v40 = vpop.f32.mrf.mxu0 }
 0x30d   :  { %v1828_v62 = vmax.f32 %v1796_v25, 0.0  ;;  %v1798_v17 = vadd.f32 %v1797_v40, %v3689_v33  ;;  %v1855_v46 = vadd.f32 %v1853_v27, %v1827_v1 }
 0x30f   :  { %v1829_v18 = vmax.f32 %v1798_v17, 0.0  ;;  %v1856_v59 = vadd.f32 %v1854_v51, %v1828_v62 }
 0x311   :  { %v1857_v47 = vadd.f32 %v1855_v46, %v1829_v18  ;;  %v1858_v23 = vmul.f32 0.06666667, %v1856_v59 }
 0x313   :  { %v1859_v22 = vmul.f32 0.06666667, %v1857_v47 }
 0x315   :  { %2027 = vmatprep.mubr.f32.mxu1 %v1859_v22 }
 0x316   :  { %2028 = vmatmul.mubr.f32.vlgmr.msra.gmra.mxu1 %v1858_v23 }
 0x3d6   :  { %v2250_v20 = vpop.f32.mrf.mxu1 }
 0x3d8   :  { %v2251_v31 = vpop.f32.mrf.mxu1 }
 0x3d9   :  { %v2252_v44 = vadd.f32 %v2251_v31, %v2250_v20 }
 0x3db   :  { %v2030_v3 = vadd.f32 %v2252_v44, %v2217_v26 }
 0x3dd   :  { %2033 = vst [vmem:[%s3739_s12] sm:$0xff] %v2030_v3 }

</bundles_post_ra>
